<compile_context>
chip_gen: v6e
topology: v6e:2x2x1
jax: 0.10.0
libtpu: 0.0.40
codegen_flags: <defaults>
</compile_context>

<pallas_src>
import jax
import jax.numpy as jnp
from jax.experimental import pallas as pl
from jax.experimental.pallas import tpu as pltpu

D_IN, D_H1, D_H2, D_OUT = 768, 512, 256, 1


def _round_up(x, m):
    return ((x + m - 1) // m) * m


def _pick_tiles(B, S, max_tb=128, max_ts=512):
    """Pick (batch_tile, seq_tile).

    The bf16 token block is TB*TS*768*2 bytes; keep it <= ~6 MiB per buffer
    (~12 MiB double-buffered) so total resident VMEM (tok + weights + pooled
    accumulator) stays well under the 32 MiB limit requested below, which is
    safe on v5e/v6e (128 MiB VMEM) and v7x (64 MiB per TC).
    """
    TB = min(max_tb, _round_up(B, 8))
    budget = 6 * 1024 * 1024
    ts_fit = max(8, (budget // (TB * D_IN * 2)) // 8 * 8)
    TS = min(_round_up(S, 8), ts_fit, max_ts)
    return TB, TS


def fused_head_kernel(tok_ref, invlen_ref, w1_ref, b1_ref, w2_ref, b2_ref,
                      w3t_ref, b3_ref, out_ref, pooled_acc):
    """Masked-mean pooling (accumulated over sequence tiles) + regression head.

    Grid = (batch_tiles, seq_tiles).  Masked / padded tokens were redirected
    to an all-zero embedding row in the wrapper, so a plain sum over the tile
    is already the masked sum; the mask only enters via 1/len.
    """
    j = pl.program_id(1)

    @pl.when(j == 0)
    def _():
        pooled_acc[...] = jnp.zeros_like(pooled_acc)

    # bf16 token block -> f32 (no bf16 elementwise math on v5e), sublane-reduce
    # over the sequence tile and accumulate.
    tok = tok_ref[...].astype(jnp.float32)                 # (TB, TS, 768)
    pooled_acc[...] += jnp.sum(tok, axis=1)                # (TB, 768)

    @pl.when(j == pl.num_programs(1) - 1)
    def _():
        pooled = pooled_acc[...] * invlen_ref[...]         # (TB, 768) masked mean

        # Linear(768, 512) + ReLU  (bf16 MXU matmul, f32 accumulate/bias/ReLU)
        h1 = jnp.dot(pooled.astype(jnp.bfloat16), w1_ref[...],
                     preferred_element_type=jnp.float32) + b1_ref[...]
        h1 = jnp.maximum(h1, 0.0)
        # Dropout(0.1) == identity at inference.

        # Linear(512, 256) + ReLU
        h2 = jnp.dot(h1.astype(jnp.bfloat16), w2_ref[...],
                     preferred_element_type=jnp.float32) + b2_ref[...]
        h2 = jnp.maximum(h2, 0.0)
        # Dropout(0.1) == identity at inference.

        # Linear(256, 1): N=1 output -> VPU multiply + lane reduce (skip MXU),
        # stored lane-dense as a (1, TB) row (unmasked stores).
        w3_row = w3t_ref[...].astype(jnp.float32)          # (1, 256)
        y = jnp.sum(h2 * w3_row, axis=-1, keepdims=True) + b3_ref[...]   # (TB, 1)
        out_ref[...] = y.reshape(1, y.shape[0])            # (1, TB)


def magnitude_forward(params, input_ids, attention_mask, *, tb=None, ts=None):
    B, S = input_ids.shape
    TB, TS = _pick_tiles(B, S)
    if tb is not None:
        TB = tb
    if ts is not None:
        TS = ts
    Bp = _round_up(B, TB)
    Sp = _round_up(S, TS)

    ids = input_ids.astype(jnp.int32)
    mask = attention_mask.astype(jnp.int32)
    if Bp != B or Sp != S:
        ids = jnp.pad(ids, ((0, Bp - B), (0, Sp - S)))
        mask = jnp.pad(mask, ((0, Bp - B), (0, Sp - S)))

    # TODO(synk): the frozen ToolBench SentenceTransformer (full BERT encoder)
    # has no clean Pallas equivalent; stand-in = deterministic bf16
    # embedding-table lookup.  Its masked-mean pooling IS fused into the
    # Pallas kernel below.  Masking is folded into the gather: masked / padded
    # positions point at the all-zero last row of the table.
    zero_row = params["emb_table"].shape[0] - 1
    ids = jnp.where(mask > 0, ids, zero_row)
    tok = jnp.take(params["emb_table"], ids, axis=0)          # (Bp, Sp, 768) bf16

    inv_len = 1.0 / jnp.maximum(
        jnp.sum(mask.astype(jnp.float32), axis=-1, keepdims=True), 1e-9)  # (Bp, 1)

    grid = (Bp // TB, Sp // TS)
    const = lambda i, j: (0, 0)   # weights/biases: same block every step (VMEM-resident)

    out = pl.pallas_call(
        fused_head_kernel,
        out_shape=jax.ShapeDtypeStruct((Bp // TB, 1, TB), jnp.float32),
        grid_spec=pltpu.PrefetchScalarGridSpec(
            num_scalar_prefetch=0,
            grid=grid,
            in_specs=[
                pl.BlockSpec((TB, TS, D_IN), lambda i, j: (i, j, 0)),  # tokens (bf16)
                pl.BlockSpec((TB, 1), lambda i, j: (i, 0)),            # 1/len  (f32)
                pl.BlockSpec((D_IN, D_H1), const),                     # w1 (bf16)
                pl.BlockSpec((1, D_H1), const),                        # b1 (f32)
                pl.BlockSpec((D_H1, D_H2), const),                     # w2 (bf16)
                pl.BlockSpec((1, D_H2), const),                        # b2 (f32)
                pl.BlockSpec((1, D_H2), const),                        # w3^T (bf16, lane-dense row)
                pl.BlockSpec((1, D_OUT), const),                       # b3 (f32)
            ],
            out_specs=pl.BlockSpec((None, 1, TB), lambda i, j: (i, 0, 0)),
            scratch_shapes=[pltpu.VMEM((TB, D_IN), jnp.float32)],      # pooled-sum acc
        ),
        compiler_params=pltpu.CompilerParams(
            # Batch tiles are independent -> shard across v7x's 2 TensorCores;
            # the sequence axis carries the accumulator -> arbitrary.
            dimension_semantics=("parallel", "arbitrary"),
            vmem_limit_bytes=32 * 1024 * 1024,
        ),
    )(tok, inv_len, params["w1"], params["b1"], params["w2"], params["b2"],
      params["w3t"], params["b3"])

    return out.reshape(Bp)[:B]                                  # squeeze(-1) -> (B,)


def init_params(key, vocab_size):
    ks = jax.random.split(key, 7)
    scale = 0.02
    emb = scale * jax.random.normal(ks[0], (vocab_size, D_IN), jnp.float32)
    # Append an all-zero row: masked / padded token ids are redirected here so
    # the kernel never needs the attention mask for the pooled sum.
    emb = jnp.concatenate([emb, jnp.zeros((1, D_IN), jnp.float32)], axis=0)
    return {
        "emb_table": emb.astype(jnp.bfloat16),                  # (vocab+1, 768) bf16
        # Weights in bf16 (halves weight DMA, feeds the MXU); biases stay f32;
        # w3 stored transposed as a (1, 256) lane-dense row.
        "w1": (scale * jax.random.normal(ks[1], (D_IN, D_H1), jnp.float32)).astype(jnp.bfloat16),
        "b1": scale * jax.random.normal(ks[2], (1, D_H1), jnp.float32),
        "w2": (scale * jax.random.normal(ks[3], (D_H1, D_H2), jnp.float32)).astype(jnp.bfloat16),
        "b2": scale * jax.random.normal(ks[4], (1, D_H2), jnp.float32),
        "w3t": (scale * jax.random.normal(ks[5], (1, D_H2), jnp.float32)).astype(jnp.bfloat16),
        "b3": scale * jax.random.normal(ks[6], (1, D_OUT), jnp.float32),
    }


def reference_forward(params, input_ids, attention_mask):
    """Pure-JAX reference with identical numerics (bf16 table/weights, f32 accum)."""
    m = attention_mask.astype(jnp.float32)
    tok = jnp.take(params["emb_table"], input_ids, axis=0).astype(jnp.float32)
    pooled = (tok * m[..., None]).sum(axis=1) / jnp.maximum(m.sum(-1, keepdims=True), 1e-9)
    h1 = jnp.maximum(
        jnp.dot(pooled.astype(jnp.bfloat16), params["w1"],
                preferred_element_type=jnp.float32) + params["b1"], 0.0)
    h2 = jnp.maximum(
        jnp.dot(h1.astype(jnp.bfloat16), params["w2"],
                preferred_element_type=jnp.float32) + params["b2"], 0.0)
    out = jnp.sum(h2 * params["w3t"].astype(jnp.float32), axis=-1, keepdims=True) + params["b3"]
    return out[:, 0]


if __name__ == "__main__":
    VOCAB = 64
    key = jax.random.PRNGKey(0)
    k_params, k_ids1, k_ids2 = jax.random.split(key, 3)
    params = init_params(k_params, VOCAB)

    # Case 1: small shapes implied by the module (batch=2, seq=8); exercises
    # the batch-padding + slice-back path (B=2 -> TB=8).
    B1, S1 = 2, 8
    ids1 = jax.random.randint(k_ids1, (B1, S1), 0, VOCAB, dtype=jnp.int32)
    mask1 = jnp.array([[1] * S1, [1] * (S1 // 2) + [0] * (S1 - S1 // 2)], dtype=jnp.int32)
    out1 = jax.block_until_ready(magnitude_forward(params, ids1, mask1))
    ref1 = reference_forward(params, ids1, mask1)
    assert out1.shape == (B1,), f"bad output shape {out1.shape}"
    assert jnp.allclose(out1, ref1, atol=5e-3, rtol=1e-2), (out1, ref1)

    # Case 2: forces multiple batch tiles AND multiple sequence tiles (3x3 grid),
    # exercising the pooled-sum accumulator, ragged masks and padding paths.
    B2, S2 = 20, 24
    ids2 = jax.random.randint(k_ids2, (B2, S2), 0, VOCAB, dtype=jnp.int32)
    lens = 1 + (jnp.arange(B2) * 7) % S2
    mask2 = (jnp.arange(S2)[None, :] < lens[:, None]).astype(jnp.int32)
    out2 = jax.block_until_ready(magnitude_forward(params, ids2, mask2, tb=8, ts=8))
    ref2 = reference_forward(params, ids2, mask2)
    assert out2.shape == (B2,), f"bad output shape {out2.shape}"
    assert jnp.allclose(out2, ref2, atol=5e-3, rtol=1e-2), (out2, ref2)

    print("KERNEL_OK")
</pallas_src>

<mosaic_0001>
module attributes {stable_mosaic.version = 11 : i64} {
  func.func @fused_head_kernel(%arg0: i32, %arg1: i32, %arg2: memref<8x8x768xbf16, #tpu.memory_space<vmem>>, %arg3: memref<8x1xf32, #tpu.memory_space<vmem>>, %arg4: memref<768x512xbf16, #tpu.memory_space<vmem>>, %arg5: memref<1x512xf32, #tpu.memory_space<vmem>>, %arg6: memref<512x256xbf16, #tpu.memory_space<vmem>>, %arg7: memref<1x256xf32, #tpu.memory_space<vmem>>, %arg8: memref<1x256xbf16, #tpu.memory_space<vmem>>, %arg9: memref<1x1xf32, #tpu.memory_space<vmem>>, %arg10: memref<1x1x8xf32, #tpu.memory_space<vmem>>, %arg11: memref<8x768xf32, #tpu.memory_space<vmem>>) attributes {dimension_semantics = [#tpu.dimension_semantics<parallel>, #tpu.dimension_semantics<arbitrary>], iteration_bounds = array<i64: 1, 1>, scalar_prefetch = 0 : i64, scratch_operands = 1 : i64, tpu.core_type = #tpu.core_type<tc>, window_params = [{transform_indices = @transform_0, window_bounds = array<i64: 8, 8, 768>}, {transform_indices = @transform_1, window_bounds = array<i64: 8, 1>}, {pipeline_mode = #tpu.pipeline_mode<synchronous>, transform_indices = @transform_2, window_bounds = array<i64: 768, 512>}, {pipeline_mode = #tpu.pipeline_mode<synchronous>, transform_indices = @transform_3, window_bounds = array<i64: 1, 512>}, {pipeline_mode = #tpu.pipeline_mode<synchronous>, transform_indices = @transform_4, window_bounds = array<i64: 512, 256>}, {pipeline_mode = #tpu.pipeline_mode<synchronous>, transform_indices = @transform_5, window_bounds = array<i64: 1, 256>}, {pipeline_mode = #tpu.pipeline_mode<synchronous>, transform_indices = @transform_6, window_bounds = array<i64: 1, 256>}, {pipeline_mode = #tpu.pipeline_mode<synchronous>, transform_indices = @transform_7, window_bounds = array<i64: 1, 1>}, {transform_indices = @transform_8, window_bounds = array<i64: 1, 1, 8>}]} {
    %c0_i32 = arith.constant 0 : i32
    %0 = arith.cmpi eq, %arg1, %c0_i32 : i32
    %1 = arith.extui %0 : i1 to i32
    %c0_i32_0 = arith.constant 0 : i32
    %2 = arith.cmpi ne, %1, %c0_i32_0 : i32
    scf.if %2 {
      %cst_9 = arith.constant 0.000000e+00 : f32
      %12 = vector.broadcast %cst_9 : f32 to vector<8x768xf32>
      %c0_10 = arith.constant 0 : index
      %c0_11 = arith.constant 0 : index
      %13 = vector.load %arg11[%c0_10, %c0_11] : memref<8x768xf32, #tpu.memory_space<vmem>>, vector<8x768xf32>
      tpu.vector_store %arg11[%c0_10, %c0_11], %12 {strides = array<i32>} : memref<8x768xf32, #tpu.memory_space<vmem>>, vector<8x768xf32>,
    } else {
    }
    %c0 = arith.constant 0 : index
    %c0_1 = arith.constant 0 : index
    %c0_2 = arith.constant 0 : index
    %3 = vector.load %arg2[%c0, %c0_1, %c0_2] : memref<8x8x768xbf16, #tpu.memory_space<vmem>>, vector<8x8x768xbf16>
    %4 = arith.extf %3 : vector<8x8x768xbf16> to vector<8x8x768xf32>
    %c0_3 = arith.constant 0 : index
    %c0_4 = arith.constant 0 : index
    %5 = vector.load %arg11[%c0_3, %c0_4] : memref<8x768xf32, #tpu.memory_space<vmem>>, vector<8x768xf32>
    %cst = arith.constant dense<0.000000e+00> : vector<8x768xf32>
    %6 = vector.multi_reduction <add>, %4, %cst [1] : vector<8x8x768xf32> to vector<8x768xf32>
    %7 = arith.addf %5, %6 : vector<8x768xf32>
    %c0_5 = arith.constant 0 : index
    %c0_6 = arith.constant 0 : index
    %8 = vector.load %arg11[%c0_5, %c0_6] : memref<8x768xf32, #tpu.memory_space<vmem>>, vector<8x768xf32>
    tpu.vector_store %arg11[%c0_5, %c0_6], %7 {strides = array<i32>} : memref<8x768xf32, #tpu.memory_space<vmem>>, vector<8x768xf32>,
    %c0_i32_7 = arith.constant 0 : i32
    %9 = arith.cmpi eq, %arg1, %c0_i32_7 : i32
    %10 = arith.extui %9 : i1 to i32
    %c0_i32_8 = arith.constant 0 : i32
    %11 = arith.cmpi ne, %10, %c0_i32_8 : i32
    scf.if %11 {
      %c0_9 = arith.constant 0 : index
      %c0_10 = arith.constant 0 : index
      %12 = vector.load %arg11[%c0_9, %c0_10] : memref<8x768xf32, #tpu.memory_space<vmem>>, vector<8x768xf32>
      %c0_11 = arith.constant 0 : index
      %c0_12 = arith.constant 0 : index
      %13 = vector.load %arg3[%c0_11, %c0_12] : memref<8x1xf32, #tpu.memory_space<vmem>>, vector<8x1xf32>
      %14 = vector.broadcast %13 : vector<8x1xf32> to vector<8x768xf32>
      %15 = arith.mulf %12, %14 : vector<8x768xf32>
      %16 = arith.truncf %15 : vector<8x768xf32> to vector<8x768xbf16>
      %c0_13 = arith.constant 0 : index
      %c0_14 = arith.constant 0 : index
      %17 = vector.load %arg4[%c0_13, %c0_14] : memref<768x512xbf16, #tpu.memory_space<vmem>>, vector<768x512xbf16>
      %cst_15 = arith.constant dense<0.000000e+00> : vector<8x512xf32>
      %18 = tpu.matmul %16, %17, %cst_15 {dimension_numbers = #tpu.dot_dimension_numbers<[1], [0], [0], [1], [0, 0, 1, 1], [], []>} : vector<8x768xbf16>, vector<768x512xbf16>, vector<8x512xf32> -> vector<8x512xf32>
      %c0_16 = arith.constant 0 : index
      %c0_17 = arith.constant 0 : index
      %19 = vector.load %arg5[%c0_16, %c0_17] : memref<1x512xf32, #tpu.memory_space<vmem>>, vector<1x512xf32>
      %20 = vector.broadcast %19 : vector<1x512xf32> to vector<8x512xf32>
      %21 = arith.addf %18, %20 : vector<8x512xf32>
      %cst_18 = arith.constant 0.000000e+00 : f32
      %22 = vector.broadcast %cst_18 : f32 to vector<8x512xf32>
      %23 = arith.maximumf %21, %22 : vector<8x512xf32>
      %24 = arith.truncf %23 : vector<8x512xf32> to vector<8x512xbf16>
      %c0_19 = arith.constant 0 : index
      %c0_20 = arith.constant 0 : index
      %25 = vector.load %arg6[%c0_19, %c0_20] : memref<512x256xbf16, #tpu.memory_space<vmem>>, vector<512x256xbf16>
      %cst_21 = arith.constant dense<0.000000e+00> : vector<8x256xf32>
      %26 = tpu.matmul %24, %25, %cst_21 {dimension_numbers = #tpu.dot_dimension_numbers<[1], [0], [0], [1], [0, 0, 1, 1], [], []>} : vector<8x512xbf16>, vector<512x256xbf16>, vector<8x256xf32> -> vector<8x256xf32>
      %c0_22 = arith.constant 0 : index
      %c0_23 = arith.constant 0 : index
      %27 = vector.load %arg7[%c0_22, %c0_23] : memref<1x256xf32, #tpu.memory_space<vmem>>, vector<1x256xf32>
      %28 = vector.broadcast %27 : vector<1x256xf32> to vector<8x256xf32>
      %29 = arith.addf %26, %28 : vector<8x256xf32>
      %cst_24 = arith.constant 0.000000e+00 : f32
      %30 = vector.broadcast %cst_24 : f32 to vector<8x256xf32>
      %31 = arith.maximumf %29, %30 : vector<8x256xf32>
      %c0_25 = arith.constant 0 : index
      %c0_26 = arith.constant 0 : index
      %32 = vector.load %arg8[%c0_25, %c0_26] : memref<1x256xbf16, #tpu.memory_space<vmem>>, vector<1x256xbf16>
      %33 = arith.extf %32 : vector<1x256xbf16> to vector<1x256xf32>
      %34 = vector.broadcast %33 : vector<1x256xf32> to vector<8x256xf32>
      %35 = arith.mulf %31, %34 : vector<8x256xf32>
      %cst_27 = arith.constant dense<0.000000e+00> : vector<8xf32>
      %36 = vector.multi_reduction <add>, %35, %cst_27 [1] : vector<8x256xf32> to vector<8xf32>
      %37 = vector.shape_cast %36 : vector<8xf32> to vector<8x1xf32>
      %c0_28 = arith.constant 0 : index
      %c0_29 = arith.constant 0 : index
      %38 = vector.load %arg9[%c0_28, %c0_29] : memref<1x1xf32, #tpu.memory_space<vmem>>, vector<1x1xf32>
      %39 = vector.broadcast %38 : vector<1x1xf32> to vector<8x1xf32>
      %40 = arith.addf %37, %39 : vector<8x1xf32>
      %41 = vector.shape_cast %40 : vector<8x1xf32> to vector<1x8xf32>
      %c0_30 = arith.constant 0 : index
      %c0_31 = arith.constant 0 : index
      %c0_32 = arith.constant 0 : index
      %42 = vector.load %arg10[%c0_30, %c0_31, %c0_32] : memref<1x1x8xf32, #tpu.memory_space<vmem>>, vector<1x1x8xf32>
      %43 = vector.shape_cast %42 : vector<1x1x8xf32> to vector<1x8xf32>
      %44 = vector.shape_cast %41 : vector<1x8xf32> to vector<1x1x8xf32>
      tpu.vector_store %arg10[%c0_30, %c0_31, %c0_32], %44 {strides = array<i32>} : memref<1x1x8xf32, #tpu.memory_space<vmem>>, vector<1x1x8xf32>,
    } else {
    }
    return
  }
  func.func @transform_0(%arg0: i32, %arg1: i32) -> (i32, i32, i32) {
    %c0_i32 = arith.constant 0 : i32
    %c0_i32_0 = arith.constant 0 : i32
    return %arg0, %arg1, %c0_i32 : i32, i32, i32
  }
  func.func @transform_1(%arg0: i32, %arg1: i32) -> (i32, i32) {
    %c0_i32 = arith.constant 0 : i32
    %c0_i32_0 = arith.constant 0 : i32
    return %arg0, %c0_i32 : i32, i32
  }
  func.func @transform_2(%arg0: i32, %arg1: i32) -> (i32, i32) {
    %c0_i32 = arith.constant 0 : i32
    %c0_i32_0 = arith.constant 0 : i32
    %c0_i32_1 = arith.constant 0 : i32
    return %c0_i32, %c0_i32_0 : i32, i32
  }
  func.func @transform_3(%arg0: i32, %arg1: i32) -> (i32, i32) {
    %c0_i32 = arith.constant 0 : i32
    %c0_i32_0 = arith.constant 0 : i32
    %c0_i32_1 = arith.constant 0 : i32
    return %c0_i32, %c0_i32_0 : i32, i32
  }
  func.func @transform_4(%arg0: i32, %arg1: i32) -> (i32, i32) {
    %c0_i32 = arith.constant 0 : i32
    %c0_i32_0 = arith.constant 0 : i32
    %c0_i32_1 = arith.constant 0 : i32
    return %c0_i32, %c0_i32_0 : i32, i32
  }
  func.func @transform_5(%arg0: i32, %arg1: i32) -> (i32, i32) {
    %c0_i32 = arith.constant 0 : i32
    %c0_i32_0 = arith.constant 0 : i32
    %c0_i32_1 = arith.constant 0 : i32
    return %c0_i32, %c0_i32_0 : i32, i32
  }
  func.func @transform_6(%arg0: i32, %arg1: i32) -> (i32, i32) {
    %c0_i32 = arith.constant 0 : i32
    %c0_i32_0 = arith.constant 0 : i32
    %c0_i32_1 = arith.constant 0 : i32
    return %c0_i32, %c0_i32_0 : i32, i32
  }
  func.func @transform_7(%arg0: i32, %arg1: i32) -> (i32, i32) {
    %c0_i32 = arith.constant 0 : i32
    %c0_i32_0 = arith.constant 0 : i32
    %c0_i32_1 = arith.constant 0 : i32
    return %c0_i32, %c0_i32_0 : i32, i32
  }
  func.func @transform_8(%arg0: i32, %arg1: i32) -> (i32, i32, i32) {
    %c0_i32 = arith.constant 0 : i32
    %c0_i32_0 = arith.constant 0 : i32
    %c0_i32_1 = arith.constant 0 : i32
    return %arg0, %c0_i32, %c0_i32_0 : i32, i32, i32
  }
}

</mosaic_0001>

<bundles_post_ra>
// kernel: tpu_custom_call.1
= control target key start
LH: loop header
LB: loop body
LE: loop exit
PB: predicated region body
PF: predicated region fallthrough
CT: control target
= control target key end

     0   :  { %s3653_s0 = inlined_call_operand.hbm [shape: bf16[8,8,768], index: 0, kind: input, shape index: {}]   ;;  %s3654_s1 = inlined_call_operand.vmem [shape: f32[8,1], index: 1, kind: input, shape index: {}]   ;;  %s3655_s2 = inlined_call_operand.hbm [shape: bf16[768,512], index: 2, kind: input, shape index: {}]   ;;  %s3656_s3 = inlined_call_operand.vmem [shape: f32[1,512], index: 3, kind: input, shape index: {}]   ;;  %s3657_s4 = inlined_call_operand.hbm [shape: bf16[512,256], index: 4, kind: input, shape index: {}]   ;;  %s3658_s5 = inlined_call_operand.vmem [shape: f32[1,256], index: 5, kind: input, shape index: {}]   ;;  %s3659_s6 = inlined_call_operand.vmem [shape: bf16[1,256], index: 6, kind: input, shape index: {}]   ;;  %s3660_s7 = inlined_call_operand.<no memory space> [shape: f32[1,1], index: 7, kind: input, shape index: {}]   ;;  %s3661_s8 = inlined_call_operand.hbm [shape: f32[1,1,8], index: 8, kind: output, shape index: {}]  }
   0x1   :  { %v13_v0 = vstv %s3660_s7 }
   0x2   :  { %14 = vst [vmem:[#allocation3] sm:$0x1] %v13_v0 }
   0x3   :  { %15 = vsyncpa [#allocation5], 0 }
   0x4   :  { %16 = vsyncpa [#allocation8], 0 }
   0x5   :  { %17 = vsyncpa [#allocation6], 0  ;;  %s3302_s29 = smov [#allocation7]  }
   0x6   :  { %s37_s30 = sshll.u32 %s3302_s29, 4  ;;  %s38_s30 = int_to_ptr.vmem [resolvable:$true] %s37_s30 }
   0x7   :  { %s3224_s9 = scalar_lea.vmem %s38_s30, 24576  ;;  %p3229_p1 = scmp.lt.s32.totalorder %s38_s30, %s38_s30 }
   0x8   :  { %p3225_p0 = scmp.ne.s32.totalorder %s38_s30, %s3224_s9  ;;  %p3230_p2 = scmp.lt.s32.totalorder %s3224_s9, %s3224_s9 }
   0xa   :  { %p3231_p3 = por %p3230_p2, %p3229_p1 }
   0xc   :  { %p3232_p4 = pnand %p3231_p3, %p3225_p0 }
   0xe   :  { %3235 = shalt.err (!%p3232_p4)
}
   0xf   :  { %s3303_s10 = smov 256   ;;  %s3304_s11 = smov 16  }
  0x10   :  { %43 = dma.hbm_to_vmem [thread:$0]  %s3655_s2, 24576, %s38_s30, [#allocation8], %s3303_s10, %s3303_s10, %s3304_s11  }
  0x11   :  { %s3305_s7 = smov [#allocation4]  }
  0x12   :  { %s23_s14 = sshll.u32 %s3305_s7, 4  ;;  %s24_s14 = int_to_ptr.vmem [resolvable:$true] %s23_s14 }
  0x13   :  { %s3244_s15 = scalar_lea.vmem %s24_s14, 3072  ;;  %p3249_p6 = scmp.lt.s32.totalorder %s24_s14, %s24_s14 }
  0x14   :  { %p3245_p5 = scmp.ne.s32.totalorder %s24_s14, %s3244_s15  ;;  %p3250_p7 = scmp.lt.s32.totalorder %s3244_s15, %s3244_s15 }
  0x16   :  { %p3251_p8 = por %p3250_p7, %p3249_p6 }
  0x18   :  { %p3252_p9 = pnand %p3251_p8, %p3245_p5 }
  0x1a   :  { %3255 = shalt.err (!%p3252_p9)
}
  0x1b   :  { %s3306_s16 = smov 384   ;;  %s3307_s17 = smov 24  }
  0x1c   :  { %29 = dma.hbm_to_vmem [thread:$0]  %s3653_s0, 3072, %s24_s14, [#allocation5], %s3306_s16, %s3306_s16, %s3307_s17  }
  0x1d   :  { %s3308_s20 = smov [#allocation9]  }
  0x1e   :  { %s51_s21 = sshll.u32 %s3308_s20, 4  ;;  %s52_s21 = int_to_ptr.vmem [resolvable:$true] %s51_s21 }
  0x1f   :  { %s3264_s2 = scalar_lea.vmem %s52_s21, 8192  ;;  %p3269_p11 = scmp.lt.s32.totalorder %s52_s21, %s52_s21 }
  0x20   :  { %p3265_p10 = scmp.ne.s32.totalorder %s52_s21, %s3264_s2  ;;  %p3270_p12 = scmp.lt.s32.totalorder %s3264_s2, %s3264_s2 }
  0x22   :  { %p3271_p13 = por %p3270_p12, %p3269_p11 }
  0x24   :  { %p3272_p0 = pnand %p3271_p13, %p3265_p10 }
  0x26   :  { %3275 = shalt.err (!%p3272_p0)
}
  0x27   :  { %s3309_s22 = smov 128   ;;  %s3310_s23 = smov 8  }
  0x28   :  { %57 = dma.hbm_to_vmem [thread:$0]  %s3657_s4, 8192, %s52_s21, [#allocation8], %s3309_s22, %s3309_s22, %s3310_s23  }
  0x29   :  { %3296 = dma.done.wait [#allocation5], 3072  }
  0x2a   :  { %3297 = vsyncadd [#allocation5], 4294964224 }
  0x2b   :  { %3298 = dma.done.wait [#allocation8], 32768  }
  0x2c   :  { %3299 = vsyncadd [#allocation8], 4294934528  ;;  %v3311_v1 = vmov 0   ;;  %v573_v2 = vld [vmem:[%s3654_s1] sm:$0xff]  ;;  %v3377_v53 = vld [vmem:[#allocation4 + $0x30] sm:$0xff]  ;;  %vm497_vm0 = vcmask 1041409  }
  0x2d   :  { %2830 = vset.pattern.permute.xlu0 %v3311_v1  ;;  %2831 = vset.pattern.permute.xlu1 %v3311_v1  ;;  %v2832_v3 = vld [vmem:[#allocation7 + $0xe4] ss:$16 sps:$4 sm:$0xff]   ;;  %v2836_v5 = vld [vmem:[#allocation7 + $0xe0] ss:$16 sps:$4 sm:$0xff]   ;;  %v3375_v52 = vld [vmem:[#allocation4 + $0x18] sm:$0xff]  ;;  %v120_v62 = vunpack.c.h.bf16 %v3377_v53  ;;  %vm499_vm1 = vcmask 1042434  }
  0x2e   :  { %576 = vperm.xlu0 %2830, %v573_v2   ;;  %v2834_v4 = vld [vmem:[#allocation7 + $0x2e4] ss:$16 sps:$4 sm:$0xff]   ;;  %v2837_v6 = vld [vmem:[#allocation7 + $0x2e0] ss:$16 sps:$4 sm:$0xff]   ;;  %1765 = vmatprep.subr.bf16.mxu0 %v2832_v3  ;;  %v3379_v54 = vld [vmem:[#allocation4 + $0x48] sm:$0xff]  ;;  %v114_v58 = vunpack.c.h.bf16 %v3375_v52  ;;  %vm501_vm2 = vcmask 1043459  }
  0x2f   :  { %v2838_v7 = vld [vmem:[#allocation7 + $0xc4] ss:$16 sps:$4 sm:$0xff]   ;;  %1806 = vmatprep.subr.bf16.mxu1 %v2834_v4  ;;  %1766 = vmatpush1.bf16.msra.mxu0 %v2836_v5  ;;  %v2842_v9 = vld [vmem:[#allocation7 + $0xc0] ss:$16 sps:$4 sm:$0xff]   ;;  %v3383_v56 = vld [vmem:[#allocation4 + $0x78] sm:$0xff]  ;;  %v126_v63 = vunpack.c.h.bf16 %v3379_v54  ;;  %vm503_vm3 = vcmask 1044484  }
  0x30   :  { %v2840_v8 = vld [vmem:[#allocation7 + $0x2c4] ss:$16 sps:$4 sm:$0xff]   ;;  %1807 = vmatpush1.bf16.msra.mxu1 %v2837_v6  ;;  %1767 = vmatprep.subr.bf16.mxu0 %v2838_v7  ;;  %v2843_v10 = vld [vmem:[#allocation7 + $0x2c0] ss:$16 sps:$4 sm:$0xff]   ;;  %v3389_v61 = vld [vmem:[#allocation4 + $0xa8] sm:$0xff]  ;;  %v138_v2 = vunpack.c.h.bf16 %v3383_v56  ;;  %vm505_vm4 = vcmask 1045509  }
  0x31   :  { %1808 = vmatprep.subr.bf16.mxu1 %v2840_v8  ;;  %v2844_v11 = vld [vmem:[#allocation7 + $0xa4] ss:$16 sps:$4 sm:$0xff]   ;;  %v2848_v13 = vld [vmem:[#allocation7 + $0xa0] ss:$16 sps:$4 sm:$0xff]   ;;  %v150_v7 = vunpack.c.h.bf16 %v3389_v61  ;;  %vm507_vm5 = vcmask 1046534   ;;  %vm509_vm6 = vcmask 1047559  }
  0x32   :  { %v2846_v12 = vld [vmem:[#allocation7 + $0x2a4] ss:$16 sps:$4 sm:$0xff]   ;;  %v2849_v14 = vld [vmem:[#allocation7 + $0x2a0] ss:$16 sps:$4 sm:$0xff]   ;;  %vm2544_vm7 = vcmask 57344  }
  0x33   :  { %1768 = vmatpush1.bf16.msra.mxu0 %v2842_v9  ;;  %v2850_v15 = vld [vmem:[#allocation7 + $0x84] ss:$16 sps:$4 sm:$0xff]   ;;  %v2854_v17 = vld [vmem:[#allocation7 + $0x80] ss:$16 sps:$4 sm:$0xff]   ;;  %v203_v9 = vrot.slane %v114_v58, 4 }
  0x34   :  { %1809 = vmatpush1.bf16.msra.mxu1 %v2843_v10  ;;  %1769 = vmatprep.subr.bf16.mxu0 %v2844_v11  ;;  %v2852_v16 = vld [vmem:[#allocation7 + $0x284] ss:$16 sps:$4 sm:$0xff]   ;;  %v2855_v18 = vld [vmem:[#allocation7 + $0x280] ss:$16 sps:$4 sm:$0xff]   ;;  %v239_v10 = vrot.slane %v120_v62, 4  ;;  %v275_v11 = vrot.slane %v126_v63, 4 }
  0x35   :  { %1810 = vmatprep.subr.bf16.mxu1 %v2846_v12  ;;  %v2856_v19 = vld [vmem:[#allocation7 + $0x64] ss:$16 sps:$4 sm:$0xff]   ;;  %v2860_v21 = vld [vmem:[#allocation7 + $0x60] ss:$16 sps:$4 sm:$0xff]  }
  0x36   :  { %v2858_v20 = vld [vmem:[#allocation7 + $0x264] ss:$16 sps:$4 sm:$0xff]   ;;  %v2861_v22 = vld [vmem:[#allocation7 + $0x260] ss:$16 sps:$4 sm:$0xff]  }
  0x37   :  { %1770 = vmatpush1.bf16.msra.mxu0 %v2848_v13  ;;  %v2862_v23 = vld [vmem:[#allocation7 + $0x44] ss:$16 sps:$4 sm:$0xff]   ;;  %v2866_v25 = vld [vmem:[#allocation7 + $0x40] ss:$16 sps:$4 sm:$0xff]   ;;  %v347_v13 = vrot.slane %v138_v2, 4 }
  0x38   :  { %1811 = vmatpush1.bf16.msra.mxu1 %v2849_v14  ;;  %1771 = vmatprep.subr.bf16.mxu0 %v2850_v15  ;;  %v2864_v24 = vld [vmem:[#allocation7 + $0x244] ss:$16 sps:$4 sm:$0xff]   ;;  %v2867_v26 = vld [vmem:[#allocation7 + $0x240] ss:$16 sps:$4 sm:$0xff]   ;;  %v419_v15 = vrot.slane %v150_v7, 4 }
  0x39   :  { %1812 = vmatprep.subr.bf16.mxu1 %v2852_v16  ;;  %v2868_v27 = vld [vmem:[#allocation7 + $0x24] ss:$16 sps:$4 sm:$0xff]   ;;  %v2872_v29 = vld [vmem:[#allocation7 + $0x20] ss:$16 sps:$4 sm:$0xff]  }
  0x3a   :  { %v2870_v28 = vld [vmem:[#allocation7 + $0x224] ss:$16 sps:$4 sm:$0xff]   ;;  %v2873_v30 = vld [vmem:[#allocation7 + $0x220] ss:$16 sps:$4 sm:$0xff]  }
  0x3b   :  { %1772 = vmatpush1.bf16.msra.mxu0 %v2854_v17  ;;  %v2874_v31 = vld [vmem:[#allocation7 + $0x4] ss:$16 sps:$4 sm:$0xff]   ;;  %v2878_v33 = vld [vmem:[#allocation7] ss:$16 sps:$4 sm:$0xff]  }
  0x3c   :  { %1813 = vmatpush1.bf16.msra.mxu1 %v2855_v18  ;;  %1773 = vmatprep.subr.bf16.mxu0 %v2856_v19  ;;  %v2876_v32 = vld [vmem:[#allocation7 + $0x204] ss:$16 sps:$4 sm:$0xff]   ;;  %v2879_v34 = vld [vmem:[#allocation7 + $0x200] ss:$16 sps:$4 sm:$0xff]   ;;  %v204_v18 = vadd.f32 %v203_v9, %v114_v58  ;;  %v240_v19 = vadd.f32 %v239_v10, %v120_v62 }
  0x3d   :  { %1814 = vmatprep.subr.bf16.mxu1 %v2858_v20  ;;  %v2880_v35 = vld [vmem:[#allocation7 + $0x1e4] ss:$16 sps:$4 sm:$0xff]   ;;  %v2884_v37 = vld [vmem:[#allocation7 + $0x1e0] ss:$16 sps:$4 sm:$0xff]   ;;  %v276_v20 = vadd.f32 %v275_v11, %v126_v63  ;;  %v3410_v11 = vld [vmem:[#allocation4 + $0x68] sm:$0xff] }
  0x3e   :  { %v2882_v36 = vld [vmem:[#allocation7 + $0x3e4] ss:$16 sps:$4 sm:$0xff]   ;;  %v2885_v38 = vld [vmem:[#allocation7 + $0x3e0] ss:$16 sps:$4 sm:$0xff]  }
  0x3f   :  { %1774 = vmatpush1.bf16.msra.mxu0 %v2860_v21  ;;  %v2886_v39 = vld [vmem:[#allocation7 + $0x1c4] ss:$16 sps:$4 sm:$0xff]   ;;  %v2890_v41 = vld [vmem:[#allocation7 + $0x1c0] ss:$16 sps:$4 sm:$0xff]  }
  0x40   :  { %1815 = vmatpush1.bf16.msra.mxu1 %v2861_v22  ;;  %1775 = vmatprep.subr.bf16.mxu0 %v2862_v23  ;;  %v2888_v40 = vld [vmem:[#allocation7 + $0x3c4] ss:$16 sps:$4 sm:$0xff]   ;;  %v2891_v42 = vld [vmem:[#allocation7 + $0x3c0] ss:$16 sps:$4 sm:$0xff]   ;;  %v348_v23 = vadd.f32 %v347_v13, %v138_v2 }
  0x41   :  { %1816 = vmatprep.subr.bf16.mxu1 %v2864_v24  ;;  %v2892_v43 = vld [vmem:[#allocation7 + $0x1a4] ss:$16 sps:$4 sm:$0xff]   ;;  %v2896_v45 = vld [vmem:[#allocation7 + $0x1a0] ss:$16 sps:$4 sm:$0xff]  }
  0x42   :  { %v2894_v44 = vld [vmem:[#allocation7 + $0x3a4] ss:$16 sps:$4 sm:$0xff]   ;;  %v2897_v46 = vld [vmem:[#allocation7 + $0x3a0] ss:$16 sps:$4 sm:$0xff]  }
  0x43   :  { %1776 = vmatpush1.bf16.msra.mxu0 %v2866_v25  ;;  %v2898_v47 = vld [vmem:[#allocation7 + $0x184] ss:$16 sps:$4 sm:$0xff]   ;;  %v2902_v49 = vld [vmem:[#allocation7 + $0x180] ss:$16 sps:$4 sm:$0xff]   ;;  %v420_v25 = vadd.f32 %v419_v15, %v150_v7  ;;  %v119_v7 = vunpack.c.l.bf16 %v3377_v53 }
  0x44   :  { %1817 = vmatpush1.bf16.msra.mxu1 %v2867_v26  ;;  %1777 = vmatprep.subr.bf16.mxu0 %v2868_v27  ;;  %v2900_v48 = vld [vmem:[#allocation7 + $0x384] ss:$16 sps:$4 sm:$0xff]   ;;  %v2903_v50 = vld [vmem:[#allocation7 + $0x380] ss:$16 sps:$4 sm:$0xff]  }
  0x45   :  { %1818 = vmatprep.subr.bf16.mxu1 %v2870_v28  ;;  %v3373_v51 = vld [vmem:[#allocation4] sm:$0xff]  ;;  %v3387_v60 = vld [vmem:[#allocation4 + $0x90] sm:$0xff]  ;;  %v205_v28 = vrot.slane %v204_v18, 2 }
  0x46   :  { %v3381_v55 = vld [vmem:[#allocation4 + $0x60] sm:$0xff]  ;;  %v108_v57 = vunpack.c.h.bf16 %v3373_v51  ;;  %v144_v6 = vunpack.c.h.bf16 %v3387_v60  ;;  %v107_v58 = vunpack.c.l.bf16 %v3373_v51 }
  0x47   :  { %1778 = vmatpush1.bf16.msra.mxu0 %v2872_v29  ;;  %v2904_v59 = vld [vmem:[#allocation7 + $0x164] ss:$16 sps:$4 sm:$0xff]   ;;  %v132_v1 = vunpack.c.h.bf16 %v3381_v55  ;;  %v2908_v3 = vld [vmem:[#allocation7 + $0x160] ss:$16 sps:$4 sm:$0xff]   ;;  %v241_v29 = vrot.slane %v240_v19, 2  ;;  %v131_v9 = vunpack.c.l.bf16 %v3381_v55 }
  0x48   :  { %1819 = vmatpush1.bf16.msra.mxu1 %v2873_v30  ;;  %1779 = vmatprep.subr.bf16.mxu0 %v2874_v31  ;;  %v2906_v0 = vld [vmem:[#allocation7 + $0x364] ss:$16 sps:$4 sm:$0xff]   ;;  %v2909_v4 = vld [vmem:[#allocation7 + $0x360] ss:$16 sps:$4 sm:$0xff]   ;;  %v167_v8 = vrot.slane %v108_v57, 4  ;;  %v383_v14 = vrot.slane %v144_v6, 4 }
  0x49   :  { %1820 = vmatprep.subr.bf16.mxu1 %v2876_v32  ;;  %v2910_v5 = vld [vmem:[#allocation7 + $0x144] ss:$16 sps:$4 sm:$0xff]   ;;  %v311_v12 = vrot.slane %v132_v1, 4  ;;  %v2914_v21 = vld [vmem:[#allocation7 + $0x140] ss:$16 sps:$4 sm:$0xff]   ;;  %v277_v30 = vrot.slane %v276_v20, 2 }
  0x4a   :  { %v2912_v16 = vld [vmem:[#allocation7 + $0x344] ss:$16 sps:$4 sm:$0xff]   ;;  %v168_v17 = vadd.f32 %v167_v8, %v108_v57  ;;  %v384_v24 = vadd.f32 %v383_v14, %v144_v6  ;;  %v2915_v26 = vld [vmem:[#allocation7 + $0x340] ss:$16 sps:$4 sm:$0xff]   ;;  %v3397_v57 = vld [vmem:[#allocation4 + $0x8] sm:$0xff]  ;;  %v125_v8 = vunpack.c.l.bf16 %v3379_v54 }
  0x4b   :  { %1780 = vmatpush1.bf16.msra.mxu0 %v2878_v33  ;;  %v312_v22 = vadd.f32 %v311_v12, %v132_v1  ;;  %v2916_v31 = vld [vmem:[#allocation7 + $0x124] ss:$16 sps:$4 sm:$0xff]   ;;  %v349_v33 = vrot.slane %v348_v23, 2  ;;  %v2926_v63 = vld [vmem:[#allocation7 + $0x100] ss:$16 sps:$4 sm:$0xff]  }
  0x4c   :  { %1821 = vmatpush1.bf16.msra.mxu1 %v2879_v34  ;;  %1781 = vmatprep.subr.bf16.mxu0 %v2880_v35  ;;  %v169_v27 = vrot.slane %v168_v17, 2  ;;  %v385_v34 = vrot.slane %v384_v24, 2  ;;  %v421_v35 = vrot.slane %v420_v25, 2  ;;  %v3400_v62 = vld [vmem:[#allocation4 + $0x20] sm:$0xff] }
  0x4d   :  { %1822 = vmatprep.subr.bf16.mxu1 %v2882_v36  ;;  %v313_v32 = vrot.slane %v312_v22, 2  ;;  %v2918_v36 = vld [vmem:[#allocation7 + $0x324] ss:$16 sps:$4 sm:$0xff]   ;;  %v2927_v6 = vld [vmem:[#allocation7 + $0x300] ss:$16 sps:$4 sm:$0xff]  }
  0x4e   :  { %v3412_v12 = vld [vmem:[#allocation4 + $0x80] sm:$0xff] }
  0x4f   :  { %1782 = vmatpush2.bf16.msra.mxu0 %v2884_v37  ;;  %v2920_v37 = vld [vmem:[#allocation7 + $0x120] ss:$16 sps:$4 sm:$0xff]  }
  0x50   :  { %1823 = vmatpush2.bf16.msra.mxu1 %v2885_v38  ;;  %1783 = vmatprep.subr.bf16.mxu0 %v2886_v39  ;;  %v170_v38 = vadd.f32 %v169_v27, %v168_v17  ;;  %v206_v39 = vadd.f32 %v205_v28, %v204_v18  ;;  %v3415_v17 = vld [vmem:[#allocation4 + $0x98] sm:$0xff]  ;;  %v137_v18 = vunpack.c.l.bf16 %v3383_v56 }
  0x51   :  { %1824 = vmatprep.subr.bf16.mxu1 %v2888_v40  ;;  %v242_v40 = vadd.f32 %v241_v29, %v240_v19  ;;  %v2933_v28 = vld [vmem:[#allocation7 + $0xec] ss:$16 sps:$4 sm:$0xff]   ;;  %v149_v29 = vunpack.c.l.bf16 %v3389_v61 }
  0x53   :  { %1784 = vmatpush2.bf16.msra.mxu0 %v2890_v41  ;;  %v278_v41 = vadd.f32 %v277_v30, %v276_v20  ;;  %v110_v20 = vunpack.c.h.bf16 %v3397_v57 }
  0x54   :  { %1825 = vmatpush2.bf16.msra.mxu1 %v2891_v42  ;;  %1785 = vmatprep.subr.bf16.mxu0 %v2892_v43  ;;  %v2921_v42 = vld [vmem:[#allocation7 + $0x320] ss:$16 sps:$4 sm:$0xff]   ;;  %v2922_v43 = vld [vmem:[#allocation7 + $0x104] ss:$16 sps:$4 sm:$0xff]  }
  0x55   :  { %1826 = vmatprep.subr.bf16.mxu1 %v2894_v44  ;;  %v314_v44 = vadd.f32 %v313_v32, %v312_v22  ;;  %v2930_v22 = vld [vmem:[#allocation7 + $0x4e4] ss:$16 sps:$4 sm:$0xff]   ;;  %v140_v32 = vunpack.c.h.bf16 %v3412_v12 }
  0x57   :  { %1786 = vmatpush2.bf16.msra.mxu0 %v2896_v45  ;;  %v350_v45 = vadd.f32 %v349_v33, %v348_v23  ;;  %v315_v13 = vrot.slane %v314_v44, 1  ;;  %v143_v23 = vunpack.c.l.bf16 %v3387_v60 }
  0x58   :  { %1827 = vmatpush2.bf16.msra.mxu1 %v2897_v46  ;;  %1787 = vmatprep.subr.bf16.mxu0 %v2898_v47  ;;  %v2924_v46 = vld [vmem:[#allocation7 + $0x304] ss:$16 sps:$4 sm:$0xff]   ;;  %v171_v47 = vrot.slane %v170_v38, 1 }
  0x59   :  { %1828 = vmatprep.subr.bf16.mxu1 %v2900_v48  ;;  %v207_v48 = vrot.slane %v206_v39, 1  ;;  %v351_v14 = vrot.slane %v350_v45, 1  ;;  %v316_v33 = vadd.f32 %v315_v13, %v314_v44  ;;  %v377_v54 = vrot.slane %v143_v23, 4 }
  0x5a   :  { %v172_v1 = vadd.f32 %v171_v47, %v170_v38  ;;  %v359_v47 = vrot.slane %v140_v32, 4 }
  0x5b   :  { %1788 = vmatpush2.bf16.msra.mxu0 %v2902_v49  ;;  %v243_v49 = vrot.slane %v242_v40, 1  ;;  %v208_v2 = vadd.f32 %v207_v48, %v206_v39  ;;  %v179_v39 = vrot.slane %v110_v20, 4 }
  0x5c   :  { %1829 = vmatpush2.bf16.msra.mxu1 %v2903_v50  ;;  %1789 = vmatprep.subr.bf16.mxu0 %v2904_v59  ;;  %v386_v50 = vadd.f32 %v385_v34, %v384_v24  ;;  %v422_v59 = vadd.f32 %v421_v35, %v420_v25  ;;  %v3421_v25 = vld [vmem:[#allocation4 + $0xb0] sm:$0xff]  ;;  %v352_v34 = vadd.f32 %v351_v14, %v350_v45 }
  0x5d   :  { %1830 = vmatprep.subr.bf16.mxu1 %v2906_v0  ;;  %v113_v0 = vunpack.c.l.bf16 %v3375_v52  ;;  %v244_v10 = vadd.f32 %v243_v49, %v242_v40  ;;  %v152_v38 = vunpack.c.h.bf16 %v3421_v25  ;;  %v180_v44 = vadd.f32 %v179_v39, %v110_v20 }
  0x5e   :  { %v387_v15 = vrot.slane %v386_v50, 1  ;;  %v423_v19 = vrot.slane %v422_v59, 1 }
  0x5f   :  { %1790 = vmatpush2.bf16.msra.mxu0 %v2908_v3  ;;  %v279_v3 = vrot.slane %v278_v41, 1 }
  0x60   :  { %1831 = vmatpush2.bf16.msra.mxu1 %v2909_v4  ;;  %1791 = vmatprep.subr.bf16.mxu0 %v2910_v5  ;;  %v3403_v4 = vld [vmem:[#allocation4 + $0x38] sm:$0xff]  ;;  %v3405_v5 = vld [vmem:[#allocation4 + $0x50] sm:$0xff]  ;;  %v3429_v35 = vadd.f32 %v387_v15, %v386_v50 }
  0x61   :  { %1832 = vmatprep.subr.bf16.mxu1 %v2912_v16  ;;  %v511_v16 = vsel %vm497_vm0, %v208_v2, %v172_v1  ;;  %v280_v24 = vadd.f32 %v279_v3, %v278_v41  ;;  %v128_v27 = vunpack.c.h.bf16 %v3405_v5  ;;  %v181_v1 = vrot.slane %v180_v44, 2 }
  0x62   :  { %v512_v30 = vsel %vm499_vm1, %v244_v10, %v511_v16  ;;  %v360_v3 = vadd.f32 %v359_v47, %v140_v32  ;;  %v109_v16 = vunpack.c.l.bf16 %v3397_v57  ;;  %v127_v39 = vunpack.c.l.bf16 %v3405_v5 }
  0x63   :  { %1792 = vmatpush2.bf16.msra.mxu0 %v2914_v21  ;;  %v116_v21 = vunpack.c.h.bf16 %v3400_v62  ;;  %v513_v41 = vsel %vm501_vm2, %v280_v24, %v512_v30  ;;  %v115_v24 = vunpack.c.l.bf16 %v3400_v62 }
  0x64   :  { %1833 = vmatpush2.bf16.msra.mxu1 %v2915_v26  ;;  %1793 = vmatprep.subr.bf16.mxu0 %v2916_v31  ;;  %v122_v26 = vunpack.c.h.bf16 %v3403_v4  ;;  %v134_v31 = vunpack.c.h.bf16 %v3410_v11  ;;  %v361_v20 = vrot.slane %v360_v3, 2  ;;  %v173_v60 = vrot.slane %v109_v16, 4 }
  0x65   :  { %1834 = vmatprep.subr.bf16.mxu1 %v2918_v36  ;;  %v146_v36 = vunpack.c.h.bf16 %v3415_v17  ;;  %v215_v40 = vrot.slane %v116_v21, 4  ;;  %v209_v61 = vrot.slane %v115_v24, 4 }
  0x67   :  { %1794 = vmatpush2.bf16.msra.mxu0 %v2920_v37  ;;  %v3432_v37 = vadd.f32 %v423_v19, %v422_v59  ;;  %v216_v45 = vadd.f32 %v215_v40, %v116_v21  ;;  %v395_v48 = vrot.slane %v146_v36, 4  ;;  %v431_v59 = vrot.slane %v152_v38, 4 }
  0x68   :  { %1835 = vmatpush2.bf16.msra.mxu1 %v2921_v42  ;;  %1795 = vmatprep.subr.bf16.mxu0 %v2922_v43  ;;  %v251_v42 = vrot.slane %v122_v26, 4  ;;  %v287_v43 = vrot.slane %v128_v27, 4  ;;  %v182_v19 = vadd.f32 %v181_v1, %v180_v44  ;;  %v514_v21 = vsel %vm503_vm3, %v316_v33, %v513_v41 }
  0x69   :  { %1836 = vmatprep.subr.bf16.mxu1 %v2924_v46  ;;  %v323_v46 = vrot.slane %v134_v31, 4  ;;  %v217_v2 = vrot.slane %v216_v45, 2  ;;  %v432_v15 = vadd.f32 %v431_v59, %v152_v38  ;;  %v362_v38 = vadd.f32 %v361_v20, %v360_v3 }
  0x6a   :  { %v252_v49 = vadd.f32 %v251_v42, %v122_v26  ;;  %v288_v50 = vadd.f32 %v287_v43, %v128_v27  ;;  %v515_v42 = vsel %vm505_vm4, %v352_v34, %v514_v21  ;;  %v133_v43 = vunpack.c.l.bf16 %v3410_v11 }
  0x6b   :  { %1796 = vmatpush2.bf16.msra.mxu0 %v2926_v63  ;;  %v324_v63 = vadd.f32 %v323_v46, %v134_v31  ;;  %v433_v40 = vrot.slane %v432_v15, 2  ;;  %v139_v33 = vunpack.c.l.bf16 %v3412_v12  ;;  %v145_v46 = vunpack.c.l.bf16 %v3415_v17 }
  0x6c   :  { %1837 = vmatpush2.bf16.msra.mxu1 %v2927_v6  ;;  %1847 = vmatprep.subr.bf16.mxu0 %v2930_v22  ;;  %v396_v6 = vadd.f32 %v395_v48, %v146_v36  ;;  %v253_v10 = vrot.slane %v252_v49, 2  ;;  %v289_v13 = vrot.slane %v288_v50, 2  ;;  %v218_v22 = vadd.f32 %v217_v2, %v216_v45 }
  0x6d   :  { %1888 = vmatprep.subr.bf16.mxu1 %v2933_v28  ;;  %v325_v14 = vrot.slane %v324_v63, 2  ;;  %v183_v28 = vrot.slane %v182_v19, 1  ;;  %v121_v36 = vunpack.c.l.bf16 %v3403_v4  ;;  %v151_v44 = vunpack.c.l.bf16 %v3421_v25 }
  0x6e   :  { %v254_v26 = vadd.f32 %v253_v10, %v252_v49  ;;  %v397_v27 = vrot.slane %v396_v6, 2  ;;  %v219_v30 = vrot.slane %v218_v22, 1  ;;  %v290_v31 = vadd.f32 %v289_v13, %v288_v50 }
  0x6f   :  { %v326_v32 = vadd.f32 %v325_v14, %v324_v63  ;;  %v184_v45 = vadd.f32 %v183_v28, %v182_v19  ;;  %v161_v63 = vrot.slane %v107_v58, 4  ;;  %v363_v59 = vrot.slane %v362_v38, 1 }
  0x70   :  { %v255_v41 = vrot.slane %v254_v26, 1  ;;  %v220_v47 = vadd.f32 %v219_v30, %v218_v22  ;;  %v291_v48 = vrot.slane %v290_v31, 1  ;;  %v398_v50 = vadd.f32 %v397_v27, %v396_v6 }
  0x71   :  { %v327_v49 = vrot.slane %v326_v32, 1  ;;  %v3448_v34 = vadd.f32 %v433_v40, %v432_v15  ;;  %v197_v1 = vrot.slane %v113_v0, 4  ;;  %v233_v2 = vrot.slane %v119_v7, 4 }
  0x72   :  { %v256_v3 = vadd.f32 %v255_v41, %v254_v26  ;;  %v162_v10 = vadd.f32 %v161_v63, %v107_v58  ;;  %v269_v13 = vrot.slane %v125_v8, 4  ;;  %v305_v6 = vrot.slane %v131_v9, 4 }
  0x73   :  { %v525_v14 = vsel %vm497_vm0, %v220_v47, %v184_v45  ;;  %v198_v15 = vadd.f32 %v197_v1, %v113_v0  ;;  %v234_v19 = vadd.f32 %v233_v2, %v119_v7  ;;  %v341_v22 = vrot.slane %v137_v18, 4 }
  0x74   :  { %v399_v20 = vrot.slane %v398_v50, 1  ;;  %v163_v51 = vrot.slane %v162_v10, 2  ;;  %v270_v58 = vadd.f32 %v269_v13, %v125_v8  ;;  %v306_v21 = vadd.f32 %v305_v6, %v131_v9 }
  0x75   :  { %v292_v26 = vadd.f32 %v291_v48, %v290_v31  ;;  %v199_v27 = vrot.slane %v198_v15, 2  ;;  %v235_v28 = vrot.slane %v234_v19, 2  ;;  %v342_v52 = vadd.f32 %v341_v22, %v137_v18 }
  0x76   :  { %v526_v53 = vsel %vm499_vm1, %v256_v3, %v525_v14  ;;  %v164_v0 = vadd.f32 %v163_v51, %v162_v10  ;;  %v271_v7 = vrot.slane %v270_v58, 2  ;;  %v307_v30 = vrot.slane %v306_v21, 2 }
  0x77   :  { %v200_v40 = vadd.f32 %v199_v27, %v198_v15  ;;  %v236_v41 = vadd.f32 %v235_v28, %v234_v19  ;;  %v343_v45 = vrot.slane %v342_v52, 2  ;;  %v413_v31 = vrot.slane %v149_v29, 4 }
  0x78   :  { %v165_v8 = vrot.slane %v164_v0, 1  ;;  %v272_v55 = vadd.f32 %v271_v7, %v270_v58  ;;  %v308_v9 = vadd.f32 %v307_v30, %v306_v21  ;;  %v378_v48 = vadd.f32 %v377_v54, %v143_v23 }
  0x79   :  { %v201_v47 = vrot.slane %v200_v40, 1  ;;  %v237_v56 = vrot.slane %v236_v41, 1  ;;  %v344_v18 = vadd.f32 %v343_v45, %v342_v52  ;;  %v3482_v63 = vsel %vm507_vm5, %v3429_v35, %v515_v42 }
  0x7a   :  { %v328_v1 = vadd.f32 %v327_v49, %v326_v32  ;;  %v166_v2 = vadd.f32 %v165_v8, %v164_v0  ;;  %v414_v3 = vadd.f32 %v413_v31, %v149_v29  ;;  %v364_v10 = vadd.f32 %v363_v59, %v362_v38 }
  0x7b   :  { %v435_v13 = vrot.slane %v3448_v34, 1  ;;  %v202_v6 = vadd.f32 %v201_v47, %v200_v40  ;;  %v379_v14 = vrot.slane %v378_v48, 2  ;;  %v527_v15 = vsel %vm501_vm2, %v292_v26, %v526_v53 }
  0x7c   :  { %v273_v19 = vrot.slane %v272_v55, 1  ;;  %v309_v22 = vrot.slane %v308_v9, 1  ;;  %v3490_v23 = vadd.f32 %v399_v20, %v398_v50  ;;  %v238_v35 = vadd.f32 %v237_v56, %v236_v41 }
  0x7d   :  { %v345_v32 = vrot.slane %v344_v18, 1  ;;  %v415_v29 = vrot.slane %v414_v3, 2  ;;  %v498_v38 = vsel %vm497_vm0, %v202_v6, %v166_v2  ;;  %v174_v42 = vadd.f32 %v173_v60, %v109_v16 }
  0x7e   :  { %v245_v49 = vrot.slane %v121_v36, 4  ;;  %v528_v59 = vsel %vm503_vm3, %v328_v1, %v527_v15  ;;  %v380_v51 = vadd.f32 %v379_v14, %v378_v48  ;;  %v210_v50 = vadd.f32 %v209_v61, %v115_v24 }
  0x7f   :  { %v281_v20 = vrot.slane %v127_v39, 4  ;;  %v274_v58 = vadd.f32 %v273_v19, %v272_v55  ;;  %v310_v21 = vadd.f32 %v309_v22, %v308_v9  ;;  %v175_v26 = vrot.slane %v174_v42, 2  ;;  %v3530_v19 = vld [vmem:[#allocation4 + $0x10] sm:$0xff] }
  0x80   :  { %v246_v27 = vadd.f32 %v245_v49, %v121_v36  ;;  %v346_v57 = vadd.f32 %v345_v32, %v344_v18  ;;  %v500_v16 = vsel %vm499_vm1, %v238_v35, %v498_v38  ;;  %v211_v28 = vrot.slane %v210_v50, 2  ;;  %v3540_v38 = vld [vmem:[#allocation4 + $0x58] sm:$0xff] }
  0x81   :  { %v282_v52 = vadd.f32 %v281_v20, %v127_v39  ;;  %v3509_v53 = vadd.f32 %v415_v29, %v414_v3  ;;  %v176_v62 = vadd.f32 %v175_v26, %v174_v42  ;;  %v317_v0 = vrot.slane %v133_v43, 4  ;;  %v3538_v29 = vld [vmem:[#allocation4 + $0x40] sm:$0xff]  ;;  %v3545_v20 = vld [vmem:[#allocation4 + $0x88] sm:$0xff] }
  0x82   :  { %v247_v24 = vrot.slane %v246_v27, 2  ;;  %v381_v7 = vrot.slane %v380_v51, 1  ;;  %v212_v30 = vadd.f32 %v211_v28, %v210_v50  ;;  %v353_v4 = vrot.slane %v139_v33, 4  ;;  %v3543_v50 = vld [vmem:[#allocation4 + $0x70] sm:$0xff]  ;;  %v3547_v26 = vld [vmem:[#allocation4 + $0xa0] sm:$0xff] }
  0x83   :  { %v283_v40 = vrot.slane %v282_v52, 2  ;;  %v502_v36 = vsel %vm501_vm2, %v274_v58, %v500_v16  ;;  %v177_v41 = vrot.slane %v176_v62, 1  ;;  %v318_v5 = vadd.f32 %v317_v0, %v133_v43 }
  0x84   :  { %v248_v45 = vadd.f32 %v247_v24, %v246_v27  ;;  %v213_v39 = vrot.slane %v212_v30, 1  ;;  %v354_v8 = vadd.f32 %v353_v4, %v139_v33  ;;  %v389_v55 = vrot.slane %v145_v46, 4 }
  0x85   :  { %v284_v54 = vadd.f32 %v283_v40, %v282_v52  ;;  %v178_v9 = vadd.f32 %v177_v41, %v176_v62  ;;  %v319_v47 = vrot.slane %v318_v5, 2  ;;  %v425_v56 = vrot.slane %v151_v44, 4 }
  0x86   :  { %v249_v31 = vrot.slane %v248_v45, 1  ;;  %v214_v18 = vadd.f32 %v213_v39, %v212_v30  ;;  %v355_v1 = vrot.slane %v354_v8, 2  ;;  %v390_v11 = vadd.f32 %v389_v55, %v145_v46  ;;  %v3534_v46 = vld [vmem:[#allocation4 + $0x28] sm:$0xff] }
  0x87   :  { %v285_v48 = vrot.slane %v284_v54, 1  ;;  %v504_v43 = vsel %vm503_vm3, %v310_v21, %v502_v36  ;;  %v320_v12 = vadd.f32 %v319_v47, %v318_v5  ;;  %v426_v33 = vadd.f32 %v425_v56, %v151_v44 }
  0x88   :  { %v250_v2 = vadd.f32 %v249_v31, %v248_v45  ;;  %v356_v6 = vadd.f32 %v355_v1, %v354_v8  ;;  %v391_v14 = vrot.slane %v390_v11, 2  ;;  %v518_v15 = vsel %vm497_vm0, %v214_v18, %v178_v9 }
  0x89   :  { %v286_v3 = vadd.f32 %v285_v48, %v284_v54  ;;  %v529_v22 = vsel %vm505_vm4, %v364_v10, %v528_v59  ;;  %v321_v60 = vrot.slane %v320_v12, 1  ;;  %v427_v35 = vrot.slane %v426_v33, 2 }
  0x8a   :  { %v519_v17 = vsel %vm499_vm1, %v250_v2, %v518_v15  ;;  %v417_v32 = vrot.slane %v3509_v53, 1  ;;  %v357_v61 = vrot.slane %v356_v6, 1  ;;  %v392_v25 = vadd.f32 %v391_v14, %v390_v11 }
  0x8b   :  { %v520_v44 = vsel %vm501_vm2, %v286_v3, %v519_v17  ;;  %v382_v42 = vadd.f32 %v381_v7, %v380_v51  ;;  %v506_v49 = vsel %vm505_vm4, %v346_v57, %v504_v43  ;;  %v322_v10 = vadd.f32 %v321_v60, %v320_v12  ;;  %v3552_v51 = vld [vmem:[#allocation4 + $0xb8] sm:$0xff] }
  0x8c   :  { %v428_v59 = vadd.f32 %v427_v35, %v426_v33  ;;  %v358_v58 = vadd.f32 %v357_v61, %v356_v6  ;;  %v393_v21 = vrot.slane %v392_v25, 1  ;;  %v112_v27 = vunpack.c.h.bf16 %v3530_v19 }
  0x8d   :  { %v118_v16 = vunpack.c.h.bf16 %v3534_v46  ;;  %v521_v52 = vsel %vm503_vm3, %v322_v10, %v520_v44  ;;  %v124_v57 = vunpack.c.h.bf16 %v3538_v29  ;;  %v130_v62 = vunpack.c.h.bf16 %v3540_v38 }
  0x8e   :  { %v429_v28 = vrot.slane %v428_v59, 1  ;;  %v436_v24 = vadd.f32 %v435_v13, %v3448_v34  ;;  %v394_v0 = vadd.f32 %v393_v21, %v392_v25  ;;  %v522_v7 = vsel %vm505_vm4, %v358_v58, %v521_v52 }
  0x8f   :  { %v136_v30 = vunpack.c.h.bf16 %v3543_v50  ;;  %v530_v40 = vsel %vm507_vm5, %v3490_v23, %v529_v22  ;;  %v418_v4 = vadd.f32 %v417_v32, %v3509_v53  ;;  %v142_v36 = vunpack.c.h.bf16 %v3545_v20 }
  0x90   :  { %v148_v41 = vunpack.c.h.bf16 %v3547_v26  ;;  %v508_v45 = vsel %vm507_vm5, %v382_v42, %v506_v49  ;;  %v430_v5 = vadd.f32 %v429_v28, %v428_v59  ;;  %v154_v34 = vunpack.c.h.bf16 %v3552_v51 }
  0x91   :  { %v191_v13 = vrot.slane %v112_v27, 4  ;;  %v523_v39 = vsel %vm507_vm5, %v394_v0, %v522_v7  ;;  %v227_v54 = vrot.slane %v118_v16, 4  ;;  %v263_v8 = vrot.slane %v124_v57, 4 }
  0x92   :  { %v299_v55 = vrot.slane %v130_v62, 4  ;;  %v335_v31 = vrot.slane %v136_v30, 4  ;;  %v371_v23 = vrot.slane %v142_v36, 4  ;;  %v407_v47 = vrot.slane %v148_v41, 4 }
  0x93   :  { %v192_v9 = vadd.f32 %v191_v13, %v112_v27  ;;  %v228_v53 = vadd.f32 %v227_v54, %v118_v16  ;;  %v264_v56 = vadd.f32 %v263_v8, %v124_v57  ;;  %v443_v48 = vrot.slane %v154_v34, 4 }
  0x94   :  { %v300_v18 = vadd.f32 %v299_v55, %v130_v62  ;;  %v336_v11 = vadd.f32 %v335_v31, %v136_v30  ;;  %v372_v43 = vadd.f32 %v371_v23, %v142_v36  ;;  %v408_v2 = vadd.f32 %v407_v47, %v148_v41  ;;  %v2928_v23 = vld [vmem:[#allocation7 + $0x4e0] ss:$16 sps:$4 sm:$0xff]   ;;  %v2931_v47 = vld [vmem:[#allocation7 + $0xe8] ss:$16 sps:$4 sm:$0xff]  }
  0x95   :  { %v193_v1 = vrot.slane %v192_v9, 2  ;;  %v229_v12 = vrot.slane %v228_v53, 2  ;;  %v265_v33 = vrot.slane %v264_v56, 2  ;;  %v444_v6 = vadd.f32 %v443_v48, %v154_v34  ;;  %v2936_v48 = vld [vmem:[#allocation7 + $0x4c4] ss:$16 sps:$4 sm:$0xff]  }
  0x96   :  { %v301_v3 = vrot.slane %v300_v18, 2  ;;  %v337_v15 = vrot.slane %v336_v11, 2  ;;  %v373_v22 = vrot.slane %v372_v43, 2  ;;  %v409_v60 = vrot.slane %v408_v2, 2 }
  0x97   :  { %v194_v14 = vadd.f32 %v193_v1, %v192_v9  ;;  %v230_v35 = vadd.f32 %v229_v12, %v228_v53  ;;  %v266_v17 = vadd.f32 %v265_v33, %v264_v56  ;;  %v445_v61 = vrot.slane %v444_v6, 2  ;;  %v2937_v33 = vld [vmem:[#allocation7 + $0xc8] ss:$16 sps:$4 sm:$0xff]  }
  0x98   :  { %v302_v32 = vadd.f32 %v301_v3, %v300_v18  ;;  %v338_v44 = vadd.f32 %v337_v15, %v336_v11  ;;  %v374_v42 = vadd.f32 %v373_v22, %v372_v43  ;;  %v410_v49 = vadd.f32 %v409_v60, %v408_v2  ;;  %v2939_v11 = vld [vmem:[#allocation7 + $0xcc] ss:$16 sps:$4 sm:$0xff]   ;;  %v2934_v2 = vld [vmem:[#allocation7 + $0x4c0] ss:$16 sps:$4 sm:$0xff]   ;;  %v2943_v60 = vld [vmem:[#allocation7 + $0xa8] ss:$16 sps:$4 sm:$0xff]  }
  0x99   :  { %v195_v25 = vrot.slane %v194_v14, 1  ;;  %v231_v10 = vrot.slane %v230_v35, 1  ;;  %v267_v59 = vrot.slane %v266_v17, 1  ;;  %v446_v21 = vadd.f32 %v445_v61, %v444_v6  ;;  %v2942_v6 = vld [vmem:[#allocation7 + $0x4a4] ss:$16 sps:$4 sm:$0xff]  }
  0x9a   :  { %v303_v58 = vrot.slane %v302_v32, 1  ;;  %v517_v27 = vsel %vm509_vm6, %v3432_v37, %v3482_v63  ;;  %v339_v28 = vrot.slane %v338_v44, 1  ;;  %v375_v52 = vrot.slane %v374_v42, 1  ;;  %v2940_v22 = vld [vmem:[#allocation7 + $0x4a0] ss:$16 sps:$4 sm:$0xff]  }
  0x9b   :  { %v196_v16 = vadd.f32 %v195_v25, %v194_v14  ;;  %v531_v57 = vsel %vm509_vm6, %v436_v24, %v530_v40  ;;  %v510_v62 = vsel %vm509_vm6, %v418_v4, %v508_v45  ;;  %v232_v0 = vadd.f32 %v231_v10, %v230_v35  ;;  %v2945_v14 = vld [vmem:[#allocation7 + $0xac] ss:$16 sps:$4 sm:$0xff]   ;;  %v2948_v35 = vld [vmem:[#allocation7 + $0x484] ss:$16 sps:$4 sm:$0xff]  }
  0x9c   :  { %v268_v7 = vadd.f32 %v267_v59, %v266_v17  ;;  %v524_v30 = vsel %vm509_vm6, %v430_v5, %v523_v39  ;;  %v304_v36 = vadd.f32 %v303_v58, %v302_v32  ;;  %v411_v41 = vrot.slane %v410_v49, 1  ;;  %v2951_v17 = vld [vmem:[#allocation7 + $0x8c] ss:$16 sps:$4 sm:$0xff]   ;;  %v2946_v32 = vld [vmem:[#allocation7 + $0x480] ss:$16 sps:$4 sm:$0xff]  }
  0x9d   :  { %v447_v34 = vrot.slane %v446_v21, 1  ;;  %v539_v13 = vsel %vm497_vm0, %v232_v0, %v196_v16  ;;  %v340_v8 = vadd.f32 %v339_v28, %v338_v44  ;;  %v376_v37 = vadd.f32 %v375_v52, %v374_v42  ;;  %v2949_v44 = vld [vmem:[#allocation7 + $0x88] ss:$16 sps:$4 sm:$0xff]   ;;  %v2954_v42 = vld [vmem:[#allocation7 + $0x464] ss:$16 sps:$4 sm:$0xff]  }
  0x9e   :  { %v540_v63 = vsel %vm499_vm1, %v268_v7, %v539_v13  ;;  %v412_v45 = vadd.f32 %v411_v41, %v410_v49  ;;  %v111_v61 = vunpack.c.l.bf16 %v3530_v19  ;;  %v117_v25 = vunpack.c.l.bf16 %v3534_v46  ;;  %v2957_v49 = vld [vmem:[#allocation7 + $0x6c] ss:$16 sps:$4 sm:$0xff]   ;;  %v2952_v59 = vld [vmem:[#allocation7 + $0x460] ss:$16 sps:$4 sm:$0xff]   ;;  %v2955_v58 = vld [vmem:[#allocation7 + $0x68] ss:$16 sps:$4 sm:$0xff]  }
  0x9f   :  { %v448_v5 = vadd.f32 %v447_v34, %v446_v21  ;;  %v541_v39 = vsel %vm501_vm2, %v304_v36, %v540_v63  ;;  %v123_v10 = vunpack.c.l.bf16 %v3538_v29  ;;  %v2960_v19 = vld [vmem:[#allocation7 + $0x444] ss:$16 sps:$4 sm:$0xff]   ;;  %v2963_v16 = vld [vmem:[#allocation7 + $0x4c] ss:$16 sps:$4 sm:$0xff]   ;;  %v129_v46 = vunpack.c.l.bf16 %v3540_v38  ;;  %v2958_v28 = vld [vmem:[#allocation7 + $0x440] ss:$16 sps:$4 sm:$0xff]  }
  0xa0   :  { %v542_v18 = vsel %vm503_vm3, %v340_v8, %v541_v39  ;;  %v185_v21 = vrot.slane %v111_v61, 4  ;;  %v2961_v52 = vld [vmem:[#allocation7 + $0x48] ss:$16 sps:$4 sm:$0xff]   ;;  %v2964_v36 = vld [vmem:[#allocation7 + $0x420] ss:$16 sps:$4 sm:$0xff]   ;;  %v141_v38 = vunpack.c.l.bf16 %v3545_v20 }
  0xa1   :  { %v543_v1 = vsel %vm505_vm4, %v376_v37, %v542_v18  ;;  %v257_v0 = vrot.slane %v123_v10, 4  ;;  %v2967_v41 = vld [vmem:[#allocation7 + $0x28] ss:$16 sps:$4 sm:$0xff]   ;;  %v293_v34 = vrot.slane %v129_v46, 4  ;;  %v2972_v13 = vld [vmem:[#allocation7 + $0x404] ss:$16 sps:$4 sm:$0xff]  }
  0xa2   :  { %v544_v43 = vsel %vm507_vm5, %v412_v45, %v543_v1  ;;  %v186_v29 = vadd.f32 %v185_v21, %v111_v61  ;;  %v2975_v8 = vld [vmem:[#allocation7 + $0xc] ss:$16 sps:$4 sm:$0xff]   ;;  %v147_v45 = vunpack.c.l.bf16 %v3547_v26  ;;  %v365_v20 = vrot.slane %v141_v38, 4  ;;  %v2976_v1 = vld [vmem:[#allocation7 + $0x5e0] ss:$16 sps:$4 sm:$0xff]  }
  0xa3   :  { %v545_v12 = vsel %vm509_vm6, %v448_v5, %v544_v43  ;;  %v258_v37 = vadd.f32 %v257_v0, %v123_v10  ;;  %v2978_v5 = vld [vmem:[#allocation7 + $0x5e4] ss:$16 sps:$4 sm:$0xff]   ;;  %v2981_v39 = vld [vmem:[#allocation7 + $0x1ec] ss:$16 sps:$4 sm:$0xff]  }
  0xa4   :  { %v187_v63 = vrot.slane %v186_v29, 2  ;;  %v401_v26 = vrot.slane %v147_v45, 4  ;;  %v2993_v61 = vld [vmem:[#allocation7 + $0x1ac] ss:$16 sps:$4 sm:$0xff]  }
  0xa9   :  { %v3576_v54 = vpop.permute.xlu0 %576 }
  0xaa   :  { %v580_v55 = vmul.f32 %v3576_v54, %v517_v27  ;;  %v582_v24 = vmul.f32 %v3576_v54, %v531_v57  ;;  %v579_v40 = vmul.f32 %v3576_v54, %v510_v62  ;;  %v581_v4 = vmul.f32 %v3576_v54, %v524_v30  ;;  %v2966_v57 = vld [vmem:[#allocation7 + $0x424] ss:$16 sps:$4 sm:$0xff]   ;;  %v2969_v62 = vld [vmem:[#allocation7 + $0x2c] ss:$16 sps:$4 sm:$0xff]  }
  0xab   :  { %v584_v3 = vmul.f32 %v3576_v54, %v545_v12  ;;  %v221_v27 = vrot.slane %v117_v25, 4  ;;  %v135_v30 = vunpack.c.l.bf16 %v3543_v50  ;;  %v294_v50 = vadd.f32 %v293_v34, %v129_v46  ;;  %v2987_v12 = vld [vmem:[#allocation7 + $0x1cc] ss:$16 sps:$4 sm:$0xff]   ;;  %v2991_v46 = vld [vmem:[#allocation7 + $0x1a8] ss:$16 sps:$4 sm:$0xff]  }
  0xac   :  { %v586_v9 = vpack.c.bf16 %v580_v55, %v580_v55  ;;  %v3584_v31 = vpack.c.bf16 %v582_v24, %v582_v24  ;;  %v3586_v53 = vpack.c.bf16 %v579_v40, %v579_v40  ;;  %v3588_v56 = vpack.c.bf16 %v581_v4, %v581_v4  ;;  %v2970_v40 = vld [vmem:[#allocation7 + $0x400] ss:$16 sps:$4 sm:$0xff]   ;;  %v2973_v4 = vld [vmem:[#allocation7 + $0x8] ss:$16 sps:$4 sm:$0xff]  }
  0xad   :  { %v3598_v15 = vpack.c.bf16 %v584_v3, %v584_v3  ;;  %v222_v7 = vadd.f32 %v221_v27, %v117_v25  ;;  %v329_v24 = vrot.slane %v135_v30, 4  ;;  %v295_v43 = vrot.slane %v294_v50, 2  ;;  %v2997_v34 = vld [vmem:[#allocation7 + $0x188] ss:$16 sps:$4 sm:$0xff]  }
  0xae   :  { %1797 = vmatprep.mubr.bf16.mxu0 %v586_v9  ;;  %1838 = vmatprep.mubr.bf16.mxu1 %v3584_v31 }
  0xaf   :  { %1798 = vmatmul.mubr.bf16.vlgmr.msra.gmra.mxu0 %v3586_v53  ;;  %1839 = vmatmul.mubr.bf16.vlgmr.msra.gmra.mxu1 %v3588_v56  ;;  %v223_v55 = vrot.slane %v222_v7, 2  ;;  %v330_v18 = vadd.f32 %v329_v24, %v135_v30 }
  0xb0   :  { %1848 = vmatpush1.bf16.msra.mxu0 %v2928_v23  ;;  %1889 = vmatpush1.bf16.msra.mxu1 %v2931_v47  ;;  %v188_v23 = vadd.f32 %v187_v63, %v186_v29 }
  0xb1   :  { %1920 = vmatprep.mubr.bf16.mxu1 %v586_v9  ;;  %1849 = vmatprep.subr.bf16.mxu0 %v2936_v48  ;;  %v259_v9 = vrot.slane %v258_v37, 2  ;;  %v224_v47 = vadd.f32 %v223_v55, %v222_v7  ;;  %v153_v48 = vunpack.c.l.bf16 %v3552_v51  ;;  %v2990_v51 = vld [vmem:[#allocation7 + $0x5a4] ss:$16 sps:$4 sm:$0xff]  }
  0xb2   :  { %1890 = vmatprep.subr.bf16.mxu1 %v2939_v11  ;;  %1879 = vmatprep.mubr.bf16.mxu0 %v3598_v15  ;;  %v2979_v11 = vld [vmem:[#allocation7 + $0x1e8] ss:$16 sps:$4 sm:$0xff]   ;;  %v189_v3 = vrot.slane %v188_v23, 1 }
  0xb4   :  { %1850 = vmatpush1.bf16.msra.mxu0 %v2934_v2  ;;  %1891 = vmatpush1.bf16.msra.mxu1 %v2937_v33  ;;  %v2984_v2 = vld [vmem:[#allocation7 + $0x5c4] ss:$16 sps:$4 sm:$0xff]   ;;  %v260_v33 = vadd.f32 %v259_v9, %v258_v37  ;;  %v3005_v37 = vld [vmem:[#allocation7 + $0x16c] ss:$16 sps:$4 sm:$0xff]  }
  0xb5   :  { %1851 = vmatprep.subr.bf16.mxu0 %v2942_v6  ;;  %1892 = vmatprep.subr.bf16.mxu1 %v2945_v14  ;;  %v225_v6 = vrot.slane %v224_v47, 1  ;;  %v366_v14 = vadd.f32 %v365_v20, %v141_v38  ;;  %v3009_v20 = vld [vmem:[#allocation7 + $0x148] ss:$16 sps:$4 sm:$0xff]  }
  0xb6   :  { %v261_v25 = vrot.slane %v260_v33, 1 }
  0xb7   :  { %v367_v10 = vrot.slane %v366_v14, 2 }
  0xb8   :  { %1852 = vmatpush1.bf16.msra.mxu0 %v2940_v22  ;;  %1893 = vmatpush1.bf16.msra.mxu1 %v2943_v60  ;;  %v331_v22 = vrot.slane %v330_v18, 2  ;;  %v2982_v60 = vld [vmem:[#allocation7 + $0x5c0] ss:$16 sps:$4 sm:$0xff]   ;;  %v262_v27 = vadd.f32 %v261_v25, %v260_v33  ;;  %v3020_v33 = vld [vmem:[#allocation7 + $0x504] ss:$16 sps:$4 sm:$0xff]  }
  0xb9   :  { %1853 = vmatprep.subr.bf16.mxu0 %v2948_v35  ;;  %1894 = vmatprep.subr.bf16.mxu1 %v2951_v17  ;;  %v2985_v35 = vld [vmem:[#allocation7 + $0x1c8] ss:$16 sps:$4 sm:$0xff]   ;;  %v296_v17 = vadd.f32 %v295_v43, %v294_v50  ;;  %v3035_v25 = vld [vmem:[#allocation7 + $0x4cc] ss:$16 sps:$4 sm:$0xff]  }
  0xbc   :  { %1854 = vmatpush1.bf16.msra.mxu0 %v2946_v32  ;;  %1895 = vmatpush1.bf16.msra.mxu1 %v2949_v44  ;;  %v437_v32 = vrot.slane %v153_v48, 4  ;;  %v402_v44 = vadd.f32 %v401_v26, %v147_v45  ;;  %v3008_v45 = vld [vmem:[#allocation7 + $0x544] ss:$16 sps:$4 sm:$0xff]   ;;  %v3023_v26 = vld [vmem:[#allocation7 + $0x10c] ss:$16 sps:$4 sm:$0xff]  }
  0xbd   :  { %1855 = vmatprep.subr.bf16.mxu0 %v2954_v42  ;;  %1896 = vmatprep.subr.bf16.mxu1 %v2957_v49  ;;  %v190_v42 = vadd.f32 %v189_v3, %v188_v23  ;;  %v226_v49 = vadd.f32 %v225_v6, %v224_v47  ;;  %v3006_v47 = vld [vmem:[#allocation7 + $0x540] ss:$16 sps:$4 sm:$0xff]  }
  0xbe   :  { %v438_v21 = vadd.f32 %v437_v32, %v153_v48  ;;  %v3014_v48 = vld [vmem:[#allocation7 + $0x524] ss:$16 sps:$4 sm:$0xff]   ;;  %v3018_v6 = vld [vmem:[#allocation7 + $0x500] ss:$16 sps:$4 sm:$0xff]  }
  0xc0   :  { %1856 = vmatpush1.bf16.msra.mxu0 %v2952_v59  ;;  %1897 = vmatpush1.bf16.msra.mxu1 %v2955_v58  ;;  %v332_v59 = vadd.f32 %v331_v22, %v330_v18  ;;  %v297_v58 = vrot.slane %v296_v17, 1  ;;  %v439_v7 = vrot.slane %v438_v21, 2 }
  0xc1   :  { %1857 = vmatprep.subr.bf16.mxu0 %v2960_v19  ;;  %1898 = vmatprep.subr.bf16.mxu1 %v2963_v16  ;;  %v403_v19 = vrot.slane %v402_v44, 2  ;;  %v2988_v16 = vld [vmem:[#allocation7 + $0x5a0] ss:$16 sps:$4 sm:$0xff]  }
  0xc2   :  { %v333_v0 = vrot.slane %v332_v59, 1  ;;  %v298_v29 = vadd.f32 %v297_v58, %v296_v17  ;;  %v440_v63 = vadd.f32 %v439_v7, %v438_v21  ;;  %v3024_v17 = vld [vmem:[#allocation7 + $0x2e8] ss:$16 sps:$4 sm:$0xff]   ;;  %v3044_v58 = vld [vmem:[#allocation7 + $0x28c] ss:$16 sps:$4 sm:$0xff]  }
  0xc3   :  { %v404_v30 = vadd.f32 %v403_v19, %v402_v44  ;;  %v3033_v44 = vld [vmem:[#allocation7 + $0x4c8] ss:$16 sps:$4 sm:$0xff]  }
  0xc4   :  { %1858 = vmatpush1.bf16.msra.mxu0 %v2958_v28  ;;  %1899 = vmatpush1.bf16.msra.mxu1 %v2961_v52  ;;  %v368_v28 = vadd.f32 %v367_v10, %v366_v14  ;;  %v532_v52 = vsel %vm497_vm0, %v226_v49, %v190_v42  ;;  %v334_v38 = vadd.f32 %v333_v0, %v332_v59  ;;  %v441_v9 = vrot.slane %v440_v63, 1  ;;  %v3021_v14 = vld [vmem:[#allocation7 + $0x108] ss:$16 sps:$4 sm:$0xff]   ;;  %v3038_v42 = vld [vmem:[#allocation7 + $0x2ac] ss:$16 sps:$4 sm:$0xff]  }
  0xc5   :  { %1859 = vmatprep.subr.bf16.mxu0 %v2966_v57  ;;  %1900 = vmatprep.subr.bf16.mxu1 %v2969_v62  ;;  %v2996_v57 = vld [vmem:[#allocation7 + $0x584] ss:$16 sps:$4 sm:$0xff]   ;;  %v2999_v62 = vld [vmem:[#allocation7 + $0x18c] ss:$16 sps:$4 sm:$0xff]   ;;  %v405_v24 = vrot.slane %v404_v30, 1 }
  0xc6   :  { %v3041_v49 = vld [vmem:[#allocation7 + $0x4ac] ss:$16 sps:$4 sm:$0xff]   ;;  %v3036_v10 = vld [vmem:[#allocation7 + $0x2a8] ss:$16 sps:$4 sm:$0xff]  }
  0xc7   :  { %v406_v23 = vadd.f32 %v405_v24, %v404_v30  ;;  %v3039_v59 = vld [vmem:[#allocation7 + $0x4a8] ss:$16 sps:$4 sm:$0xff]   ;;  %v3065_v0 = vld [vmem:[#allocation7 + $0x42c] ss:$16 sps:$4 sm:$0xff]  }
  0xc8   :  { %1860 = vmatpush1.bf16.msra.mxu0 %v2964_v36  ;;  %1901 = vmatpush1.bf16.msra.mxu1 %v2967_v41  ;;  %v533_v36 = vsel %vm499_vm1, %v262_v27, %v532_v52  ;;  %v2994_v41 = vld [vmem:[#allocation7 + $0x580] ss:$16 sps:$4 sm:$0xff]   ;;  %v3042_v21 = vld [vmem:[#allocation7 + $0x288] ss:$16 sps:$4 sm:$0xff]   ;;  %v3050_v27 = vld [vmem:[#allocation7 + $0x26c] ss:$16 sps:$4 sm:$0xff]  }
  0xc9   :  { %1861 = vmatprep.subr.bf16.mxu0 %v2972_v13  ;;  %1902 = vmatprep.subr.bf16.mxu1 %v2975_v8  ;;  %v369_v13 = vrot.slane %v368_v28, 1  ;;  %v3002_v8 = vld [vmem:[#allocation7 + $0x564] ss:$16 sps:$4 sm:$0xff]   ;;  %v534_v55 = vsel %vm501_vm2, %v298_v29, %v533_v36  ;;  %v3048_v19 = vld [vmem:[#allocation7 + $0x268] ss:$16 sps:$4 sm:$0xff]  }
  0xca   :  { %v3054_v52 = vld [vmem:[#allocation7 + $0x248] ss:$16 sps:$4 sm:$0xff]   ;;  %v3068_v30 = vld [vmem:[#allocation7 + $0x20c] ss:$16 sps:$4 sm:$0xff]  }
  0xcb   :  { %v370_v50 = vadd.f32 %v369_v13, %v368_v28  ;;  %v3059_v28 = vld [vmem:[#allocation7 + $0x44c] ss:$16 sps:$4 sm:$0xff]   ;;  %v3060_v29 = vld [vmem:[#allocation7 + $0x228] ss:$16 sps:$4 sm:$0xff]  }
  0xcc   :  { %1862 = vmatpush1.bf16.msra.mxu0 %v2970_v40  ;;  %1903 = vmatpush1.bf16.msra.mxu1 %v2973_v4  ;;  %v3000_v40 = vld [vmem:[#allocation7 + $0x560] ss:$16 sps:$4 sm:$0xff]   ;;  %v3003_v4 = vld [vmem:[#allocation7 + $0x168] ss:$16 sps:$4 sm:$0xff]   ;;  %v3071_v36 = vld [vmem:[#allocation7 + $0x40c] ss:$16 sps:$4 sm:$0xff]  }
  0xcd   :  { %1863 = vmatprep.subr.bf16.mxu0 %v2978_v5  ;;  %1904 = vmatprep.subr.bf16.mxu1 %v2981_v39  ;;  %v3011_v5 = vld [vmem:[#allocation7 + $0x14c] ss:$16 sps:$4 sm:$0xff]   ;;  %v535_v39 = vsel %vm503_vm3, %v334_v38, %v534_v55  ;;  %v3063_v7 = vld [vmem:[#allocation7 + $0x428] ss:$16 sps:$4 sm:$0xff]  }
  0xce   :  { %v536_v18 = vsel %vm505_vm4, %v370_v50, %v535_v39  ;;  %v3074_v13 = vld [vmem:[#allocation7 + $0x3ec] ss:$16 sps:$4 sm:$0xff]   ;;  %v3075_v38 = vld [vmem:[#allocation7 + $0x5e8] ss:$16 sps:$4 sm:$0xff]  }
  0xcf   :  { %v537_v43 = vsel %vm507_vm5, %v406_v23, %v536_v18  ;;  %v3083_v55 = vld [vmem:[#allocation7 + $0x5cc] ss:$16 sps:$4 sm:$0xff]   ;;  %v3078_v24 = vld [vmem:[#allocation7 + $0x3c8] ss:$16 sps:$4 sm:$0xff]  }
  0xd0   :  { %1864 = vmatpush2.bf16.msra.mxu0 %v2976_v1  ;;  %1905 = vmatpush2.bf16.msra.mxu1 %v2979_v11  ;;  %v3017_v1 = vld [vmem:[#allocation7 + $0x12c] ss:$16 sps:$4 sm:$0xff]   ;;  %v442_v11 = vadd.f32 %v441_v9, %v440_v63  ;;  %v3090_v23 = vld [vmem:[#allocation7 + $0x388] ss:$16 sps:$4 sm:$0xff]  }
  0xd1   :  { %1865 = vmatprep.subr.bf16.mxu0 %v2984_v2  ;;  %1906 = vmatprep.subr.bf16.mxu1 %v2987_v12  ;;  %v3012_v2 = vld [vmem:[#allocation7 + $0x520] ss:$16 sps:$4 sm:$0xff]   ;;  %v3015_v12 = vld [vmem:[#allocation7 + $0x128] ss:$16 sps:$4 sm:$0xff]   ;;  %v3080_v63 = vld [vmem:[#allocation7 + $0x3cc] ss:$16 sps:$4 sm:$0xff]  }
  0xd2   :  { %v538_v3 = vsel %vm509_vm6, %v442_v11, %v537_v43  ;;  %v3089_v50 = vld [vmem:[#allocation7 + $0x5ac] ss:$16 sps:$4 sm:$0xff]  }
  0xd3   :  { %v583_v22 = vmul.f32 %v3576_v54, %v538_v3  ;;  %v3030_v54 = vld [vmem:[#allocation7 + $0x2c8] ss:$16 sps:$4 sm:$0xff]   ;;  %v3092_v39 = vld [vmem:[#allocation7 + $0x38c] ss:$16 sps:$4 sm:$0xff]  }
  0xd4   :  { %1866 = vmatpush2.bf16.msra.mxu0 %v2982_v60  ;;  %1907 = vmatpush2.bf16.msra.mxu1 %v2985_v35  ;;  %v3026_v60 = vld [vmem:[#allocation7 + $0x2ec] ss:$16 sps:$4 sm:$0xff]   ;;  %v3108_v3 = vld [vmem:[#allocation7 + $0x328] ss:$16 sps:$4 sm:$0xff]  }
  0xd5   :  { %1867 = vmatprep.subr.bf16.mxu0 %v2990_v51  ;;  %1908 = vmatprep.subr.bf16.mxu1 %v2993_v61  ;;  %v3029_v35 = vld [vmem:[#allocation7 + $0x4ec] ss:$16 sps:$4 sm:$0xff]   ;;  %v3617_v32 = vpack.c.bf16 %v583_v22, %v583_v22  ;;  %v3027_v51 = vld [vmem:[#allocation7 + $0x4e8] ss:$16 sps:$4 sm:$0xff]  }
  0xd6   :  { %v3032_v61 = vld [vmem:[#allocation7 + $0x2cc] ss:$16 sps:$4 sm:$0xff]  }
  0xd7   :  { %v3095_v9 = vld [vmem:[#allocation7 + $0x58c] ss:$16 sps:$4 sm:$0xff]  }
  0xd8   :  { %1868 = vmatpush2.bf16.msra.mxu0 %v2988_v16  ;;  %1909 = vmatpush2.bf16.msra.mxu1 %v2991_v46  ;;  %v3051_v16 = vld [vmem:[#allocation7 + $0x468] ss:$16 sps:$4 sm:$0xff]   ;;  %v3056_v46 = vld [vmem:[#allocation7 + $0x24c] ss:$16 sps:$4 sm:$0xff]  }
  0xd9   :  { %1869 = vmatprep.subr.bf16.mxu0 %v2996_v57  ;;  %1910 = vmatprep.subr.bf16.mxu1 %v2999_v62  ;;  %v3057_v57 = vld [vmem:[#allocation7 + $0x448] ss:$16 sps:$4 sm:$0xff]   ;;  %v3062_v62 = vld [vmem:[#allocation7 + $0x22c] ss:$16 sps:$4 sm:$0xff]  }
  0xda   :  { %v3101_v18 = vld [vmem:[#allocation7 + $0x56c] ss:$16 sps:$4 sm:$0xff]  }
  0xdb   :  { %v3104_v11 = vld [vmem:[#allocation7 + $0x34c] ss:$16 sps:$4 sm:$0xff]  }
  0xdc   :  { %1870 = vmatpush2.bf16.msra.mxu0 %v2994_v41  ;;  %1911 = vmatpush2.bf16.msra.mxu1 %v2997_v34  ;;  %v3066_v41 = vld [vmem:[#allocation7 + $0x208] ss:$16 sps:$4 sm:$0xff]   ;;  %v3107_v43 = vld [vmem:[#allocation7 + $0x54c] ss:$16 sps:$4 sm:$0xff]  }
  0xdd   :  { %1871 = vmatprep.subr.bf16.mxu0 %v3002_v8  ;;  %1912 = vmatprep.subr.bf16.mxu1 %v3005_v37  ;;  %v3069_v34 = vld [vmem:[#allocation7 + $0x408] ss:$16 sps:$4 sm:$0xff]   ;;  %v3077_v8 = vld [vmem:[#allocation7 + $0x5ec] ss:$16 sps:$4 sm:$0xff]  }
  0xde   :  { %v3072_v37 = vld [vmem:[#allocation7 + $0x3e8] ss:$16 sps:$4 sm:$0xff]   ;;  %v3119_v22 = vld [vmem:[#allocation7 + $0x50c] ss:$16 sps:$4 sm:$0xff]  }
  0xe0   :  { %1872 = vmatpush2.bf16.msra.mxu0 %v3000_v40  ;;  %1913 = vmatpush2.bf16.msra.mxu1 %v3003_v4  ;;  %v3081_v40 = vld [vmem:[#allocation7 + $0x5c8] ss:$16 sps:$4 sm:$0xff]   ;;  %v3086_v4 = vld [vmem:[#allocation7 + $0x3ac] ss:$16 sps:$4 sm:$0xff]  }
  0xe1   :  { %1873 = vmatprep.subr.bf16.mxu0 %v3008_v45  ;;  %1914 = vmatprep.subr.bf16.mxu1 %v3011_v5  ;;  %v3084_v45 = vld [vmem:[#allocation7 + $0x3a8] ss:$16 sps:$4 sm:$0xff]  }
  0xe2   :  { %v3087_v5 = vld [vmem:[#allocation7 + $0x5a8] ss:$16 sps:$4 sm:$0xff]  }
  0xe4   :  { %1874 = vmatpush2.bf16.msra.mxu0 %v3006_v47  ;;  %1915 = vmatpush2.bf16.msra.mxu1 %v3009_v20  ;;  %v3093_v47 = vld [vmem:[#allocation7 + $0x588] ss:$16 sps:$4 sm:$0xff]   ;;  %v3098_v20 = vld [vmem:[#allocation7 + $0x36c] ss:$16 sps:$4 sm:$0xff]  }
  0xe5   :  { %1875 = vmatprep.subr.bf16.mxu0 %v3014_v48  ;;  %1916 = vmatprep.subr.bf16.mxu1 %v3017_v1  ;;  %v3096_v48 = vld [vmem:[#allocation7 + $0x368] ss:$16 sps:$4 sm:$0xff]  }
  0xe6   :  { %v3099_v1 = vld [vmem:[#allocation7 + $0x568] ss:$16 sps:$4 sm:$0xff]  }
  0xe8   :  { %1876 = vmatpush2.bf16.msra.mxu0 %v3012_v2  ;;  %1917 = vmatpush2.bf16.msra.mxu1 %v3015_v12  ;;  %v3102_v2 = vld [vmem:[#allocation7 + $0x348] ss:$16 sps:$4 sm:$0xff]  }
  0xe9   :  { %1877 = vmatprep.subr.bf16.mxu0 %v3020_v33  ;;  %1918 = vmatprep.subr.bf16.mxu1 %v3023_v26  ;;  %v3105_v12 = vld [vmem:[#allocation7 + $0x548] ss:$16 sps:$4 sm:$0xff]   ;;  %v3110_v33 = vld [vmem:[#allocation7 + $0x32c] ss:$16 sps:$4 sm:$0xff]  }
  0xea   :  { %v3113_v26 = vld [vmem:[#allocation7 + $0x52c] ss:$16 sps:$4 sm:$0xff]  }
  0xec   :  { %1878 = vmatpush2.bf16.msra.mxu0 %v3018_v6  ;;  %1919 = vmatpush2.bf16.msra.mxu1 %v3021_v14  ;;  %v3111_v6 = vld [vmem:[#allocation7 + $0x528] ss:$16 sps:$4 sm:$0xff]   ;;  %v3116_v14 = vld [vmem:[#allocation7 + $0x30c] ss:$16 sps:$4 sm:$0xff]  }
  0xed   :  { %1929 = vmatprep.subr.bf16.mxu0 %v3026_v60  ;;  %1970 = vmatprep.subr.bf16.mxu1 %v3029_v35  ;;  %v3114_v60 = vld [vmem:[#allocation7 + $0x308] ss:$16 sps:$4 sm:$0xff]  }
  0xee   :  { %v3117_v35 = vld [vmem:[#allocation7 + $0x508] ss:$16 sps:$4 sm:$0xff]  }
  0xef   :  { %1880 = vmatmul.mubr.bf16.vlgmr.msra.gmra.mxu0 %v3617_v32  ;;  %1921 = vmatmul.mubr.bf16.vlgmr.msra.gmra.mxu1 %v3586_v53  ;;  %v3047_v53 = vld [vmem:[#allocation7 + $0x48c] ss:$16 sps:$4 sm:$0xff]  }
  0xf0   :  { %1930 = vmatpush1.bf16.msra.mxu0 %v3024_v17  ;;  %1961 = vmatprep.mubr.bf16.mxu0 %v3584_v31  ;;  %v3045_v31 = vld [vmem:[#allocation7 + $0x488] ss:$16 sps:$4 sm:$0xff]   ;;  %v3122_v17 = vld [vmem:[#allocation9 + $0x74] ss:$8 sps:$4 sm:$0xff]  }
  0xf1   :  { %1971 = vmatpush1.bf16.msra.mxu1 %v3027_v51  ;;  %2002 = vmatprep.mubr.bf16.mxu1 %v3598_v15  ;;  %v3053_v15 = vld [vmem:[#allocation7 + $0x46c] ss:$16 sps:$4 sm:$0xff]   ;;  %v3120_v51 = vld [vmem:[#allocation9 + $0x70] ss:$8 sps:$4 sm:$0xff]  }
  0xf2   :  { %1931 = vmatprep.subr.bf16.mxu0 %v3032_v61  ;;  %1972 = vmatprep.subr.bf16.mxu1 %v3035_v25  ;;  %v3125_v61 = vld [vmem:[#allocation9 + $0x64] ss:$8 sps:$4 sm:$0xff]   ;;  %v3123_v25 = vld [vmem:[#allocation9 + $0x60] ss:$8 sps:$4 sm:$0xff]  }
  0xf4   :  { %1932 = vmatpush1.bf16.msra.mxu0 %v3030_v54  ;;  %v3128_v54 = vld [vmem:[#allocation9 + $0x54] ss:$8 sps:$4 sm:$0xff]  }
  0xf5   :  { %1973 = vmatpush1.bf16.msra.mxu1 %v3033_v44  ;;  %1933 = vmatprep.subr.bf16.mxu0 %v3038_v42  ;;  %v3126_v44 = vld [vmem:[#allocation9 + $0x50] ss:$8 sps:$4 sm:$0xff]   ;;  %v3131_v42 = vld [vmem:[#allocation9 + $0x44] ss:$8 sps:$4 sm:$0xff]  }
  0xf6   :  { %1974 = vmatprep.subr.bf16.mxu1 %v3041_v49  ;;  %v3129_v49 = vld [vmem:[#allocation9 + $0x40] ss:$8 sps:$4 sm:$0xff]  }
  0xf8   :  { %1934 = vmatpush1.bf16.msra.mxu0 %v3036_v10  ;;  %v3134_v10 = vld [vmem:[#allocation9 + $0x34] ss:$8 sps:$4 sm:$0xff]  }
  0xf9   :  { %1975 = vmatpush1.bf16.msra.mxu1 %v3039_v59  ;;  %1935 = vmatprep.subr.bf16.mxu0 %v3044_v58  ;;  %v3168_v59 = vld [vmem:[#allocation9 + $0x170] ss:$8 sps:$4 sm:$0xff]   ;;  %v3170_v58 = vld [vmem:[#allocation9 + $0x174] ss:$8 sps:$4 sm:$0xff]  }
  0xfa   :  { %1976 = vmatprep.subr.bf16.mxu1 %v3047_v53  ;;  %v3173_v53 = vld [vmem:[#allocation9 + $0x164] ss:$8 sps:$4 sm:$0xff]  }
  0xfc   :  { %1936 = vmatpush1.bf16.msra.mxu0 %v3042_v21  ;;  %v3137_v21 = vld [vmem:[#allocation9 + $0x24] ss:$8 sps:$4 sm:$0xff]  }
  0xfd   :  { %1977 = vmatpush1.bf16.msra.mxu1 %v3045_v31  ;;  %1937 = vmatprep.subr.bf16.mxu0 %v3050_v27  ;;  %v3176_v31 = vld [vmem:[#allocation9 + $0x154] ss:$8 sps:$4 sm:$0xff]   ;;  %v3135_v27 = vld [vmem:[#allocation9 + $0x20] ss:$8 sps:$4 sm:$0xff]  }
  0xfe   :  { %1978 = vmatprep.subr.bf16.mxu1 %v3053_v15  ;;  %v3174_v15 = vld [vmem:[#allocation9 + $0x150] ss:$8 sps:$4 sm:$0xff]  }
 0x100   :  { %1938 = vmatpush1.bf16.msra.mxu0 %v3048_v19  ;;  %v3140_v19 = vld [vmem:[#allocation9 + $0x14] ss:$8 sps:$4 sm:$0xff]  }
 0x101   :  { %1979 = vmatpush1.bf16.msra.mxu1 %v3051_v16  ;;  %1939 = vmatprep.subr.bf16.mxu0 %v3056_v46  ;;  %v3179_v16 = vld [vmem:[#allocation9 + $0x144] ss:$8 sps:$4 sm:$0xff]   ;;  %v3138_v46 = vld [vmem:[#allocation9 + $0x10] ss:$8 sps:$4 sm:$0xff]  }
 0x102   :  { %1980 = vmatprep.subr.bf16.mxu1 %v3059_v28  ;;  %v3177_v28 = vld [vmem:[#allocation9 + $0x140] ss:$8 sps:$4 sm:$0xff]  }
 0x104   :  { %1940 = vmatpush1.bf16.msra.mxu0 %v3054_v52  ;;  %v3143_v52 = vld [vmem:[#allocation9 + $0x4] ss:$8 sps:$4 sm:$0xff]  }
 0x105   :  { %1981 = vmatpush1.bf16.msra.mxu1 %v3057_v57  ;;  %1941 = vmatprep.subr.bf16.mxu0 %v3062_v62  ;;  %v3182_v57 = vld [vmem:[#allocation9 + $0x134] ss:$8 sps:$4 sm:$0xff]   ;;  %v3141_v62 = vld [vmem:[#allocation9] ss:$8 sps:$4 sm:$0xff]  }
 0x106   :  { %1982 = vmatprep.subr.bf16.mxu1 %v3065_v0  ;;  %v3180_v0 = vld [vmem:[#allocation9 + $0x130] ss:$8 sps:$4 sm:$0xff]  }
 0x108   :  { %1942 = vmatpush1.bf16.msra.mxu0 %v3060_v29  ;;  %v3146_v29 = vld [vmem:[#allocation9 + $0xf4] ss:$8 sps:$4 sm:$0xff]  }
 0x109   :  { %1983 = vmatpush1.bf16.msra.mxu1 %v3063_v7  ;;  %1943 = vmatprep.subr.bf16.mxu0 %v3068_v30  ;;  %v3185_v7 = vld [vmem:[#allocation9 + $0x124] ss:$8 sps:$4 sm:$0xff]   ;;  %v3144_v30 = vld [vmem:[#allocation9 + $0xf0] ss:$8 sps:$4 sm:$0xff]  }
 0x10a   :  { %1984 = vmatprep.subr.bf16.mxu1 %v3071_v36  ;;  %v3183_v36 = vld [vmem:[#allocation9 + $0x120] ss:$8 sps:$4 sm:$0xff]  }
 0x10c   :  { %1944 = vmatpush1.bf16.msra.mxu0 %v3066_v41  ;;  %v3149_v41 = vld [vmem:[#allocation9 + $0xe4] ss:$8 sps:$4 sm:$0xff]  }
 0x10d   :  { %1985 = vmatpush1.bf16.msra.mxu1 %v3069_v34  ;;  %1945 = vmatprep.subr.bf16.mxu0 %v3074_v13  ;;  %v3188_v34 = vld [vmem:[#allocation9 + $0x114] ss:$8 sps:$4 sm:$0xff]   ;;  %v3147_v13 = vld [vmem:[#allocation9 + $0xe0] ss:$8 sps:$4 sm:$0xff]  }
 0x10e   :  { %1986 = vmatprep.subr.bf16.mxu1 %v3077_v8  ;;  %v3186_v8 = vld [vmem:[#allocation9 + $0x110] ss:$8 sps:$4 sm:$0xff]  }
 0x110   :  { %1946 = vmatpush2.bf16.msra.mxu0 %v3072_v37  ;;  %v3152_v37 = vld [vmem:[#allocation9 + $0xd4] ss:$8 sps:$4 sm:$0xff]  }
 0x111   :  { %1987 = vmatpush2.bf16.msra.mxu1 %v3075_v38  ;;  %1947 = vmatprep.subr.bf16.mxu0 %v3080_v63  ;;  %v3191_v38 = vld [vmem:[#allocation9 + $0x104] ss:$8 sps:$4 sm:$0xff]   ;;  %v3150_v63 = vld [vmem:[#allocation9 + $0xd0] ss:$8 sps:$4 sm:$0xff]  }
 0x112   :  { %1988 = vmatprep.subr.bf16.mxu1 %v3083_v55  ;;  %v3189_v55 = vld [vmem:[#allocation9 + $0x100] ss:$8 sps:$4 sm:$0xff]  }
 0x114   :  { %1948 = vmatpush2.bf16.msra.mxu0 %v3078_v24  ;;  %v3155_v24 = vld [vmem:[#allocation9 + $0xc4] ss:$8 sps:$4 sm:$0xff]  }
 0x115   :  { %1989 = vmatpush2.bf16.msra.mxu1 %v3081_v40  ;;  %1949 = vmatprep.subr.bf16.mxu0 %v3086_v4  ;;  %v3194_v40 = vld [vmem:[#allocation9 + $0x1f4] ss:$8 sps:$4 sm:$0xff]   ;;  %v3153_v4 = vld [vmem:[#allocation9 + $0xc0] ss:$8 sps:$4 sm:$0xff]  }
 0x116   :  { %1990 = vmatprep.subr.bf16.mxu1 %v3089_v50  ;;  %v3192_v50 = vld [vmem:[#allocation9 + $0x1f0] ss:$8 sps:$4 sm:$0xff]  }
 0x118   :  { %1950 = vmatpush2.bf16.msra.mxu0 %v3084_v45  ;;  %v3158_v45 = vld [vmem:[#allocation9 + $0xb4] ss:$8 sps:$4 sm:$0xff]  }
 0x119   :  { %1991 = vmatpush2.bf16.msra.mxu1 %v3087_v5  ;;  %1951 = vmatprep.subr.bf16.mxu0 %v3092_v39  ;;  %v3197_v5 = vld [vmem:[#allocation9 + $0x1e4] ss:$8 sps:$4 sm:$0xff]   ;;  %v3156_v39 = vld [vmem:[#allocation9 + $0xb0] ss:$8 sps:$4 sm:$0xff]  }
 0x11a   :  { %1992 = vmatprep.subr.bf16.mxu1 %v3095_v9  ;;  %v3195_v9 = vld [vmem:[#allocation9 + $0x1e0] ss:$8 sps:$4 sm:$0xff]  }
 0x11c   :  { %1952 = vmatpush2.bf16.msra.mxu0 %v3090_v23  ;;  %v3161_v23 = vld [vmem:[#allocation9 + $0xa4] ss:$8 sps:$4 sm:$0xff]  }
 0x11d   :  { %1993 = vmatpush2.bf16.msra.mxu1 %v3093_v47  ;;  %1953 = vmatprep.subr.bf16.mxu0 %v3098_v20  ;;  %v3200_v47 = vld [vmem:[#allocation9 + $0x1d4] ss:$8 sps:$4 sm:$0xff]   ;;  %v3159_v20 = vld [vmem:[#allocation9 + $0xa0] ss:$8 sps:$4 sm:$0xff]  }
 0x11e   :  { %1994 = vmatprep.subr.bf16.mxu1 %v3101_v18  ;;  %v3198_v18 = vld [vmem:[#allocation9 + $0x1d0] ss:$8 sps:$4 sm:$0xff]  }
 0x120   :  { %1954 = vmatpush2.bf16.msra.mxu0 %v3096_v48  ;;  %v3164_v48 = vld [vmem:[#allocation9 + $0x94] ss:$8 sps:$4 sm:$0xff]  }
 0x121   :  { %1995 = vmatpush2.bf16.msra.mxu1 %v3099_v1  ;;  %1955 = vmatprep.subr.bf16.mxu0 %v3104_v11  ;;  %v3203_v1 = vld [vmem:[#allocation9 + $0x1c4] ss:$8 sps:$4 sm:$0xff]   ;;  %v3162_v11 = vld [vmem:[#allocation9 + $0x90] ss:$8 sps:$4 sm:$0xff]  }
 0x122   :  { %1996 = vmatprep.subr.bf16.mxu1 %v3107_v43  ;;  %v3201_v43 = vld [vmem:[#allocation9 + $0x1c0] ss:$8 sps:$4 sm:$0xff]  }
 0x124   :  { %1956 = vmatpush2.bf16.msra.mxu0 %v3102_v2  ;;  %v3167_v2 = vld [vmem:[#allocation9 + $0x84] ss:$8 sps:$4 sm:$0xff]  }
 0x125   :  { %1997 = vmatpush2.bf16.msra.mxu1 %v3105_v12  ;;  %1957 = vmatprep.subr.bf16.mxu0 %v3110_v33  ;;  %v3206_v12 = vld [vmem:[#allocation9 + $0x1b4] ss:$8 sps:$4 sm:$0xff]   ;;  %v3165_v33 = vld [vmem:[#allocation9 + $0x80] ss:$8 sps:$4 sm:$0xff]  }
 0x126   :  { %1998 = vmatprep.subr.bf16.mxu1 %v3113_v26  ;;  %v3204_v26 = vld [vmem:[#allocation9 + $0x1b0] ss:$8 sps:$4 sm:$0xff]  }
 0x128   :  { %1958 = vmatpush2.bf16.msra.mxu0 %v3108_v3 }
 0x129   :  { %1999 = vmatpush2.bf16.msra.mxu1 %v3111_v6  ;;  %1959 = vmatprep.subr.bf16.mxu0 %v3116_v14 }
 0x12a   :  { %2000 = vmatprep.subr.bf16.mxu1 %v3119_v22 }
 0x12c   :  { %1960 = vmatpush2.bf16.msra.mxu0 %v3114_v60 }
 0x12d   :  { %2001 = vmatpush2.bf16.msra.mxu1 %v3117_v35  ;;  %2415 = vmatprep.subr.bf16.mxu0 %v3122_v17 }
 0x12e   :  { %2456 = vmatprep.subr.bf16.mxu1 %v3170_v58 }
 0x12f   :  { %1962 = vmatmul.mubr.bf16.vlgmr.msra.gmra.mxu0 %v3588_v56  ;;  %v3132_v56 = vld [vmem:[#allocation9 + $0x30] ss:$8 sps:$4 sm:$0xff]  }
 0x130   :  { %2003 = vmatmul.mubr.bf16.vlgmr.msra.gmra.mxu1 %v3617_v32  ;;  %2416 = vmatpush1.bf16.msra.mxu0 %v3120_v51  ;;  %v3171_v32 = vld [vmem:[#allocation9 + $0x160] ss:$8 sps:$4 sm:$0xff]  }
 0x131   :  { %2417 = vmatprep.subr.bf16.mxu0 %v3125_v61  ;;  %2457 = vmatpush1.bf16.msra.mxu1 %v3168_v59  ;;  %v3207_v61 = vld [vmem:[#allocation9 + $0x1a0] ss:$8 sps:$4 sm:$0xff]  }
 0x132   :  { %2458 = vmatprep.subr.bf16.mxu1 %v3173_v53  ;;  %v783_v53 = vld [vmem:[%s3656_s3] sm:$0xf] }
 0x134   :  { %2418 = vmatpush1.bf16.msra.mxu0 %v3123_v25  ;;  %v3209_v25 = vld [vmem:[#allocation9 + $0x1a4] ss:$8 sps:$4 sm:$0xff]  }
 0x135   :  { %2419 = vmatprep.subr.bf16.mxu0 %v3128_v54  ;;  %2459 = vmatpush1.bf16.msra.mxu1 %v3171_v32  ;;  %v3212_v54 = vld [vmem:[#allocation9 + $0x194] ss:$8 sps:$4 sm:$0xff]  }
 0x136   :  { %2460 = vmatprep.subr.bf16.mxu1 %v3176_v31 }
 0x138   :  { %2420 = vmatpush1.bf16.msra.mxu0 %v3126_v44  ;;  %v3210_v44 = vld [vmem:[#allocation9 + $0x190] ss:$8 sps:$4 sm:$0xff]  }
 0x139   :  { %2421 = vmatprep.subr.bf16.mxu0 %v3131_v42  ;;  %2461 = vmatpush1.bf16.msra.mxu1 %v3174_v15  ;;  %v3215_v42 = vld [vmem:[#allocation9 + $0x184] ss:$8 sps:$4 sm:$0xff]  }
 0x13a   :  { %2462 = vmatprep.subr.bf16.mxu1 %v3179_v16 }
 0x13c   :  { %2422 = vmatpush1.bf16.msra.mxu0 %v3129_v49  ;;  %v3213_v49 = vld [vmem:[#allocation9 + $0x180] ss:$8 sps:$4 sm:$0xff]  }
 0x13d   :  { %2423 = vmatprep.subr.bf16.mxu0 %v3134_v10  ;;  %2463 = vmatpush1.bf16.msra.mxu1 %v3177_v28  ;;  %v785_v10 = vlaneseq }
 0x13e   :  { %2464 = vmatprep.subr.bf16.mxu1 %v3182_v57 }
 0x13f   :  { %v3626_v59 = vshrl.u32 %v785_v10, 7 }
 0x140   :  { %2424 = vmatpush1.bf16.msra.mxu0 %v3132_v56 }
 0x141   :  { %2425 = vmatprep.subr.bf16.mxu0 %v3137_v21  ;;  %2465 = vmatpush1.bf16.msra.mxu1 %v3180_v0  ;;  %v3629_v58 = vsub.s32 0, %v3626_v59  ;;  %v791_v56 = vsub.s32 1, %v3626_v59 }
 0x142   :  { %2466 = vmatprep.subr.bf16.mxu1 %v3185_v7 }
 0x143   :  { %v788_v32 = vrot.slane %v783_v53, %v3629_v58  ;;  %v792_v21 = vrot.slane %v783_v53, %v791_v56 }
 0x144   :  { %2426 = vmatpush1.bf16.msra.mxu0 %v3135_v27 }
 0x145   :  { %2427 = vmatprep.subr.bf16.mxu0 %v3140_v19  ;;  %2467 = vmatpush1.bf16.msra.mxu1 %v3183_v36 }
 0x146   :  { %2468 = vmatprep.subr.bf16.mxu1 %v3188_v34 }
 0x148   :  { %2428 = vmatpush1.bf16.msra.mxu0 %v3138_v46 }
 0x149   :  { %2429 = vmatprep.subr.bf16.mxu0 %v3143_v52  ;;  %2469 = vmatpush1.bf16.msra.mxu1 %v3186_v8  ;;  %v795_v8 = vsub.s32 2, %v3626_v59 }
 0x14a   :  { %2470 = vmatprep.subr.bf16.mxu1 %v3191_v38 }
 0x14b   :  { %v796_v38 = vrot.slane %v783_v53, %v795_v8 }
 0x14c   :  { %2430 = vmatpush1.bf16.msra.mxu0 %v3141_v62 }
 0x14d   :  { %2431 = vmatprep.subr.bf16.mxu0 %v3146_v29  ;;  %2471 = vmatpush1.bf16.msra.mxu1 %v3189_v55 }
 0x14e   :  { %2472 = vmatprep.subr.bf16.mxu1 %v3194_v40 }
 0x150   :  { %2432 = vmatpush2.bf16.msra.mxu0 %v3144_v30 }
 0x151   :  { %2433 = vmatprep.subr.bf16.mxu0 %v3149_v41  ;;  %2473 = vmatpush2.bf16.msra.mxu1 %v3192_v50 }
 0x152   :  { %2474 = vmatprep.subr.bf16.mxu1 %v3197_v5 }
 0x154   :  { %2434 = vmatpush2.bf16.msra.mxu0 %v3147_v13 }
 0x155   :  { %2435 = vmatprep.subr.bf16.mxu0 %v3152_v37  ;;  %2475 = vmatpush2.bf16.msra.mxu1 %v3195_v9  ;;  %v799_v37 = vsub.s32 3, %v3626_v59 }
 0x156   :  { %2476 = vmatprep.subr.bf16.mxu1 %v3200_v47 }
 0x158   :  { %2436 = vmatpush2.bf16.msra.mxu0 %v3150_v63  ;;  %v800_v63 = vrot.slane %v783_v53, %v799_v37 }
 0x159   :  { %2437 = vmatprep.subr.bf16.mxu0 %v3155_v24  ;;  %2477 = vmatpush2.bf16.msra.mxu1 %v3198_v18 }
 0x15a   :  { %2478 = vmatprep.subr.bf16.mxu1 %v3203_v1 }
 0x15c   :  { %2438 = vmatpush2.bf16.msra.mxu0 %v3153_v4 }
 0x15d   :  { %2439 = vmatprep.subr.bf16.mxu0 %v3158_v45  ;;  %2479 = vmatpush2.bf16.msra.mxu1 %v3201_v43 }
 0x15e   :  { %2480 = vmatprep.subr.bf16.mxu1 %v3206_v12 }
 0x160   :  { %2440 = vmatpush2.bf16.msra.mxu0 %v3156_v39 }
 0x161   :  { %2441 = vmatprep.subr.bf16.mxu0 %v3161_v23  ;;  %2481 = vmatpush2.bf16.msra.mxu1 %v3204_v26 }
 0x162   :  { %2482 = vmatprep.subr.bf16.mxu1 %v3209_v25 }
 0x164   :  { %2442 = vmatpush2.bf16.msra.mxu0 %v3159_v20 }
 0x165   :  { %2443 = vmatprep.subr.bf16.mxu0 %v3164_v48  ;;  %2483 = vmatpush2.bf16.msra.mxu1 %v3207_v61 }
 0x166   :  { %2484 = vmatprep.subr.bf16.mxu1 %v3212_v54 }
 0x168   :  { %2444 = vmatpush2.bf16.msra.mxu0 %v3162_v11 }
 0x169   :  { %2445 = vmatprep.subr.bf16.mxu0 %v3167_v2  ;;  %2485 = vmatpush2.bf16.msra.mxu1 %v3210_v44 }
 0x16a   :  { %2486 = vmatprep.subr.bf16.mxu1 %v3215_v42 }
 0x16c   :  { %2446 = vmatpush2.bf16.msra.mxu0 %v3165_v33 }
 0x16d   :  { %2487 = vmatpush2.bf16.msra.mxu1 %v3213_v49 }
 0x16f   :  { %v1799_v3 = vpop.f32.mrf.mxu0  ;;  %v1840_v6 = vpop.f32.mrf.mxu1 }
 0x170   :  { %v1800_v31 = vadd.f32 %v1799_v3, %v788_v32 }
 0x171   :  { %v1801_v14 = vpop.f32.mrf.mxu0  ;;  %v1842_v22 = vpop.f32.mrf.mxu1 }
 0x172   :  { %v1802_v27 = vadd.f32 %v1801_v14, %v792_v21  ;;  %v1841_v15 = vadd.f32 %v1840_v6, %v1800_v31  ;;  %v2499_v6 = vld [vmem:[%s3659_s6] sm:$0x3] }
 0x173   :  { %v1803_v60 = vpop.f32.mrf.mxu0  ;;  %v1844_v35 = vpop.f32.mrf.mxu1  ;;  %v2083_v14 = vld [vmem:[%s3658_s5] sm:$0x3]  ;;  %s3312_s5 = smov [#allocation10]  }
 0x174   :  { %v1843_v46 = vadd.f32 %v1842_v22, %v1802_v27  ;;  %v2500_v22 = vunpack.c.l.bf16 %v2499_v6  ;;  %v2088_v60 = vrot.slane %v2083_v14, %v3629_v58  ;;  %v2092_v35 = vrot.slane %v2083_v14, %v791_v56  ;;  %s2552_s6 = sshll.u32 %s3312_s5, 4  ;;  %s2553_s6 = int_to_ptr.vmem [resolvable:$true] %s2552_s6 }
 0x175   :  { %v1804_v17 = vpop.f32.mrf.mxu0  ;;  %v1845_v51 = vpop.f32.mrf.mxu1  ;;  %s3276_s30 = scalar_lea.vmem %s2553_s6, 16  ;;  %s3280_s9 = scalar_lea.vmem %s2553_s6, 32 }
 0x176   :  { %v2509_v17 = vrot.slane %v2500_v22, %v795_v8  ;;  %v2505_v61 = vrot.slane %v2500_v22, %v3629_v58  ;;  %p3277_p1 = scmp.ne.s32.totalorder %s2553_s6, %s3276_s30  ;;  %p3281_p2 = scmp.lt.s32.totalorder %s2553_s6, %s2553_s6 }
 0x177   :  { %p3282_p3 = scmp.lt.s32.totalorder %s3280_s9, %s3276_s30 }
 0x178   :  { %v2515_v53 = vrot.slane %v2505_v61, %v3629_v58  ;;  %v2519_v21 = vrot.slane %v2509_v17, %v3629_v58 }
 0x179   :  { %p3283_p4 = por %p3282_p3, %p3281_p2 }
 0x17b   :  { %p3284_p5 = pnand %p3283_p4, %p3277_p1 }
 0x1af   :  { %v1881_v19 = vpop.f32.mrf.mxu0  ;;  %v1922_v16 = vpop.f32.mrf.mxu1 }
 0x1b0   :  { %v1882_v28 = vadd.f32 %v1881_v19, %v1841_v15  ;;  %v1923_v55 = vadd.f32 %v1922_v16, %v796_v38 }
 0x1b1   :  { %v1883_v52 = vpop.f32.mrf.mxu0  ;;  %v1924_v57 = vpop.f32.mrf.mxu1 }
 0x1b2   :  { %v1884_v62 = vadd.f32 %v1883_v52, %v1843_v46  ;;  %v2011_v0 = vmax.f32 %v1882_v28, 0.0  ;;  %v1925_v40 = vadd.f32 %v1924_v57, %v800_v63  ;;  %v2818_v46 = vld [vmem:[#allocation3] ss:$0 sm:$0xff]  ;;  %v2538_v57 = vand.u32 127, %v785_v10 }
 0x1b3   :  { %v1885_v29 = vpop.f32.mrf.mxu0  ;;  %v1926_v7 = vpop.f32.mrf.mxu1 }
 0x1b4   :  { %v2012_v30 = vmax.f32 %v1884_v62, 0.0  ;;  %v2015_v13 = vpack.c.bf16 %v2011_v0, %v2011_v0  ;;  %v2541_v62 = vsub.s32 %v2538_v57, %v3626_v59 }
 0x1b5   :  { %v1886_v36 = vpop.f32.mrf.mxu0  ;;  %v1927_v41 = vpop.f32.mrf.mxu1 }
 0x1b6   :  { %v2016_v34 = vpack.c.bf16 %v2012_v30, %v2012_v30 }
 0x1b8   :  { %2447 = vmatprep.mubr.bf16.mxu0 %v2016_v34 }
 0x1b9   :  { %2448 = vmatmul.mubr.bf16.vlgmr.msra.gmra.mxu0 %v2015_v13 }
 0x1ef   :  { %v1963_v24 = vpop.f32.mrf.mxu0 }
 0x1f0   :  { %v1964_v4 = vadd.f32 %v1963_v24, %v1923_v55  ;;  %v2004_v50 = vpop.f32.mrf.mxu1 }
 0x1f1   :  { %v1965_v45 = vpop.f32.mrf.mxu0 }
 0x1f2   :  { %v2005_v5 = vadd.f32 %v2004_v50, %v1964_v4  ;;  %v1966_v39 = vadd.f32 %v1965_v45, %v1925_v40  ;;  %v2006_v9 = vpop.f32.mrf.mxu1 }
 0x1f3   :  { %v1967_v23 = vpop.f32.mrf.mxu0 }
 0x1f4   :  { %v2007_v47 = vadd.f32 %v2006_v9, %v1966_v39  ;;  %v2008_v20 = vpop.f32.mrf.mxu1  ;;  %v2013_v18 = vmax.f32 %v2005_v5, 0.0 }
 0x1f5   :  { %v1968_v48 = vpop.f32.mrf.mxu0 }
 0x1f6   :  { %v2014_v1 = vmax.f32 %v2007_v47, 0.0  ;;  %v2009_v11 = vpop.f32.mrf.mxu1  ;;  %v2017_v2 = vpack.c.bf16 %v2013_v18, %v2013_v18 }
 0x1f8   :  { %v2018_v43 = vpack.c.bf16 %v2014_v1, %v2014_v1 }
 0x1fa   :  { %2488 = vmatprep.mubr.bf16.mxu1 %v2018_v43 }
 0x1fb   :  { %2489 = vmatmul.mubr.bf16.vlgmr.msra.gmra.mxu1 %v2017_v2 }
 0x279   :  { %v2449_v12 = vpop.f32.mrf.mxu0 }
 0x27a   :  { %v2450_v51 = vadd.f32 %v2449_v12, %v2088_v60 }
 0x27b   :  { %v2451_v33 = vpop.f32.mrf.mxu0 }
 0x27c   :  { %v2452_v54 = vadd.f32 %v2451_v33, %v2092_v35 }
 0x27d   :  { %v2453_v26 = vpop.f32.mrf.mxu0 }
 0x27f   :  { %v2454_v3 = vpop.f32.mrf.mxu0 }
 0x2bb   :  { %v2490_v25 = vpop.f32.mrf.mxu1 }
 0x2bc   :  { %v2491_v44 = vadd.f32 %v2490_v25, %v2450_v51 }
 0x2bd   :  { %v2492_v42 = vpop.f32.mrf.mxu1 }
 0x2be   :  { %v2497_v49 = vmax.f32 %v2491_v44, 0.0  ;;  %v2493_v32 = vadd.f32 %v2492_v42, %v2452_v54 }
 0x2bf   :  { %v2494_v31 = vpop.f32.mrf.mxu1 }
 0x2c0   :  { %v2498_v27 = vmax.f32 %v2493_v32, 0.0  ;;  %v2520_v19 = vmul.f32 %v2515_v53, %v2497_v49 }
 0x2c1   :  { %v2495_v15 = vpop.f32.mrf.mxu1 }
 0x2c2   :  { %v2521_v16 = vmul.f32 %v2519_v21, %v2498_v27 }
 0x2c4   :  { %v2522_v56 = vadd.f32 %v2521_v16, %v2520_v19 }
 0x2c6   :  { %2523 = vadd.xlane.f32.xlu0 %v2522_v56 }
 0x34f   :  { %v2524_v28 = vpop.xlane.xlu0 %2523 }
 0x350   :  { %v2532_v52 = vadd.f32 %v2818_v46, %v2524_v28 }
 0x352   :  { %2535 = vperm.xlu1 %2831, %v2532_v52  }
 0x3cd   :  { %v2536_v0 = vpop.permute.xlu1 %2535 }
 0x3ce   :  { %v2542_v58 = vrot.slane %v2536_v0, %v2541_v62 }
 0x3d0   :  { %2545 = vst.msk [vmem:[#allocation10] sm:$0x1] %vm2544_vm7, %v2542_v58 }
 0x3d1   :  { %3287 = shalt.err (!%p3284_p5)
}
 0x3d2   :  { %2555 = dma.vmem_to_hbm [thread:$0]  %s2553_s6, 16, %s3661_s8, [#allocation6]  }
 0x3d3   :  { %3300 = dma.done.wait [#allocation6], 16  }
 0x3d4   :  { %3301 = vsyncadd [#allocation6], 4294967280 }
 0x3d5   :  { %2559 = vsyncpa [#allocation5], 1 }
 0x3d6   :  { %2560 = vsyncpa [#allocation8], 1 }
 0x3d7   :  { %2561 = vsyncpa [#allocation6], 1 }

</bundles_post_ra>
